<compile_context>
chip_gen: v6e
topology: v6e:2x2x1
jax: 0.10.0
libtpu: 0.0.40
codegen_flags: <defaults>
</compile_context>

<pallas_src>
import functools

import jax
import jax.numpy as jnp
from jax import lax
from jax.experimental import pallas as pl
from jax.experimental.pallas import tpu as pltpu


def _round_up(x, m):
    return ((x + m - 1) // m) * m


def _block_kernel(x_ref, w_ref, p_ref, g_ref, gt_ref, m_ref, *rest,
                  hwp, wp, taps, hw, inv_n, has_ss):
    if has_ss:
        sc_ref, sh_ref, o_ref = rest
    else:
        (o_ref,) = rest

    # ---- 3x3 "same" conv as MXU matmul(s); f32 accumulation as values ----
    # wp % 8 == 0 (wrapper pads W), so the dy*wp row offsets are sublane
    # aligned -> no relayout before the 2nd/3rd dot.
    acc = jnp.dot(x_ref[0, 0:hwp, :], w_ref[0],
                  preferred_element_type=jnp.float32)
    for dy in range(1, taps):
        acc = acc + jnp.dot(x_ref[0, dy * wp:dy * wp + hwp, :], w_ref[dy],
                            preferred_element_type=jnp.float32)

    bias = p_ref[0:1, :]          # (1, TN)
    gamma = p_ref[1:2, :]
    beta = p_ref[2:3, :]
    mask = m_ref[...]             # (1, hwp)  1.0 for valid spatial positions
    gmat = g_ref[...]             # (TN, gpt) channel -> group one-hot
    gmat_t = gt_ref[...]          # (gpt, TN)

    # ---- GroupNorm stats: masked ones-row MXU reduce, two-pass variance ----
    # s1[c] = sum_valid acc[:, c] + HW*bias[c]   (channel sums incl. conv bias)
    s1 = jnp.dot(mask, acc, preferred_element_type=jnp.float32) + hw * bias
    mean_c = jnp.dot(jnp.dot(s1, gmat, preferred_element_type=jnp.float32) * inv_n,
                     gmat_t, preferred_element_type=jnp.float32)       # (1, TN)
    off = bias - mean_c                                                # (1, TN)
    cen = acc + off                                                    # transient
    s2 = jnp.dot(mask, cen * cen, preferred_element_type=jnp.float32)  # (1, TN)
    var_c = jnp.dot(jnp.dot(s2, gmat, preferred_element_type=jnp.float32) * inv_n,
                    gmat_t, preferred_element_type=jnp.float32)        # (1, TN)

    # ---- GN affine (+ optional scale/shift) folded into one a*x+b pass ----
    a = gamma * lax.rsqrt(var_c + 1e-5)       # (1, TN)
    bvec = off * a + beta                     # (1, TN)
    if has_ss:                                # statically specialized
        m = sc_ref[0] + 1.0                   # (1, TN)
        a = a * m
        bvec = bvec * m + sh_ref[0]

    y = acc * a + bvec                        # single fused elementwise pass
    y = y * jax.nn.sigmoid(y)                 # SiLU
    o_ref[...] = y[None].astype(o_ref.dtype)


def block_forward(x_nchw, weight, bias, gamma, beta, scale_shift=None, *,
                  groups=8, mm_dtype=jnp.bfloat16):
    """Pallas implementation of Block.forward.

    x_nchw : (B, Cin, H, W)
    weight : (Cout, Cin, 3, 3) raw conv weight (standardization done here)
    bias, gamma, beta : (Cout,)
    scale_shift : optional ((B, Cout), (B, Cout))   [or (B, Cout, 1, 1)]
    mm_dtype : dtype of the MXU conv operands (bf16 recommended)
    returns (B, Cout, H, W)
    """
    B, Cin, H, W = x_nchw.shape
    Cout = weight.shape[0]
    assert Cout % groups == 0
    cs = Cout // groups

    # ---- Cout tiling: lane-dense, group-aligned (each tile = whole groups) ----
    Cp = _round_up(Cout, 128)
    if Cout % 256 == 0 and 256 % cs == 0:
        TN = 256
    elif Cout % 128 == 0 and 128 % cs == 0:
        TN = 128
    else:
        TN = Cp                    # single padded tile (zero weights/params)
    T = Cp // TN
    gpt = min(groups, TN // cs)    # groups per tile

    # ---- weight standardization (eps=1e-5 for f32, matching the module) ----
    eps = 1e-5
    w32 = weight.astype(jnp.float32)
    w_mean = jnp.mean(w32, axis=(1, 2, 3), keepdims=True)
    w_var = jnp.var(w32, axis=(1, 2, 3), keepdims=True)       # unbiased=False
    w_std = (w32 - w_mean) * lax.rsqrt(w_var + eps)

    # ---- conv-as-matmul layout ----
    fold_all = (3 * Cin) < 128     # small Cin: fold all 9 taps into K (deeper K)
    taps = 1 if fold_all else 3
    K = (9 if fold_all else 3) * Cin

    Wp = _round_up(W, 8)           # sublane-aligned row stride for dy-tap slices
    HWp = H * Wp
    R = HWp if fold_all else (H + 2) * Wp

    # weights: (Cout,Cin,3,3) -> (ky,kx,Cin,Cout) -> (taps, K, Cout) -> pad Cout
    pad_c = (0, Cp - Cout)
    w_t = jnp.transpose(w_std, (2, 3, 1, 0)).reshape(taps, K, Cout)
    w_k = jnp.pad(w_t, ((0, 0), (0, 0), pad_c)).astype(mm_dtype)

    # input: NCHW -> NHWC, cast to MXU dtype BEFORE the tap duplication,
    # zero-extend width to Wp, then 1-wide conv border on every side.
    x_nhwc = jnp.transpose(x_nchw, (0, 2, 3, 1)).astype(mm_dtype)
    xp = jnp.pad(x_nhwc, ((0, 0), (1, 1), (1, Wp - W + 1), (0, 0)))  # (B,H+2,Wp+2,Cin)
    if fold_all:
        tap_slices = [xp[:, dy:dy + H, dx:dx + Wp, :]
                      for dy in range(3) for dx in range(3)]
    else:
        tap_slices = [xp[:, :, dx:dx + Wp, :] for dx in range(3)]
    x_unf = jnp.concatenate(tap_slices, axis=-1).reshape(B, R, K)

    # per-channel params stacked [bias; gamma; beta], padded to Cp
    params = jnp.stack([
        jnp.pad(bias.astype(jnp.float32), pad_c),
        jnp.pad(gamma.astype(jnp.float32), pad_c),
        jnp.pad(beta.astype(jnp.float32), pad_c)], axis=0)            # (3, Cp)

    # channel -> (tile-local) group one-hot; tile starts are group aligned so
    # the local group index is local_channel // cs; padded channels map nowhere.
    local = jnp.arange(TN)
    gmat = (((local[:, None] // cs) == jnp.arange(gpt)[None, :])
            & (local[:, None] < Cout)).astype(jnp.float32)            # (TN, gpt)
    gmat_t = gmat.T                                                   # (gpt, TN)

    # valid-spatial mask row (zeros over the W -> Wp padding columns)
    sidx = jnp.arange(HWp)
    mask_row = ((sidx % Wp) < W).astype(jnp.float32).reshape(1, HWp)

    has_ss = scale_shift is not None
    inputs = [x_unf, w_k, params, gmat, gmat_t, mask_row]
    if has_ss:
        scale, shift = scale_shift
        scale = jnp.pad(scale.reshape(B, Cout).astype(jnp.float32),
                        ((0, 0), pad_c)).reshape(B, 1, Cp)
        shift = jnp.pad(shift.reshape(B, Cout).astype(jnp.float32),
                        ((0, 0), pad_c)).reshape(B, 1, Cp)
        inputs += [scale, shift]

    kernel = functools.partial(_block_kernel, hwp=HWp, wp=Wp, taps=taps,
                               hw=float(H * W), inv_n=1.0 / float(H * W * cs),
                               has_ss=has_ss)

    # ---- VMEM budget (with headroom) for the compiler's scoped limit ----
    esize = jnp.dtype(mm_dtype).itemsize
    osize = jnp.dtype(x_nchw.dtype).itemsize
    blk_bytes = (2 * R * K * esize             # x (double-buffered)
                 + 2 * taps * K * TN * esize   # weight tile
                 + 2 * HWp * TN * osize        # output tile
                 + 5 * HWp * TN * 4            # f32 value temporaries (acc/cen/y)
                 + 4 * (HWp + TN * (gpt + 8)) * 4)
    vmem_limit = int(min(max(2 * blk_bytes, 32 * 1024 * 1024), 100 * 1024 * 1024))

    def _specs(use_single_buffer):
        def spec(shape, index_map, invariant=False):
            if use_single_buffer and invariant:
                return pl.BlockSpec(shape, index_map,
                                    pipeline_mode=pl.Buffered(1))
            return pl.BlockSpec(shape, index_map)

        tile_inv = (T == 1)     # weight/params only invariant if Cout untiled
        ins = [
            spec((1, R, K), lambda b, t: (b, 0, 0)),
            spec((taps, K, TN), lambda b, t: (0, 0, t), invariant=tile_inv),
            spec((3, TN), lambda b, t: (0, t), invariant=tile_inv),
            spec((TN, gpt), lambda b, t: (0, 0), invariant=True),
            spec((gpt, TN), lambda b, t: (0, 0), invariant=True),
            spec((1, HWp), lambda b, t: (0, 0), invariant=True),
        ]
        if has_ss:
            ins += [spec((1, 1, TN), lambda b, t: (b, 0, t)),
                    spec((1, 1, TN), lambda b, t: (b, 0, t))]
        outs = spec((1, HWp, TN), lambda b, t: (b, 0, t))
        return ins, outs

    def _call(use_single_buffer):
        ins, outs = _specs(use_single_buffer)
        return pl.pallas_call(
            kernel,
            out_shape=jax.ShapeDtypeStruct((B, HWp, Cp), x_nchw.dtype),
            grid=(B, T),
            in_specs=ins,
            out_specs=outs,
            compiler_params=pltpu.CompilerParams(
                dimension_semantics=("parallel", "parallel"),
                vmem_limit_bytes=vmem_limit),
        )(*inputs)

    try:
        # Preferred path: single-buffer the grid-invariant operands.
        out = _call(True)
    except Exception:
        # Fallback if this jax build does not support BlockSpec.pipeline_mode.
        out = _call(False)

    out = out.reshape(B, H, Wp, Cp)[:, :, :W, :Cout]
    return jnp.transpose(out, (0, 3, 1, 2))


def block_forward_ref(x, weight, bias, gamma, beta, scale_shift=None, *, groups=8):
    """Pure-JAX reference mirroring the PyTorch module."""
    eps = 1e-5
    w_mean = jnp.mean(weight, axis=(1, 2, 3), keepdims=True)
    w_var = jnp.var(weight, axis=(1, 2, 3), keepdims=True)
    w_std = (weight - w_mean) * lax.rsqrt(w_var + eps)
    y = lax.conv_general_dilated(
        x, w_std, window_strides=(1, 1), padding="SAME",
        dimension_numbers=("NCHW", "OIHW", "NCHW"))
    y = y + bias[None, :, None, None]
    B, C, H, W = y.shape
    yg = y.reshape(B, groups, C // groups, H, W)
    mean = jnp.mean(yg, axis=(2, 3, 4), keepdims=True)
    var = jnp.var(yg, axis=(2, 3, 4), keepdims=True)
    yn = (yg - mean) * lax.rsqrt(var + 1e-5)
    yn = yn.reshape(B, C, H, W)
    yn = yn * gamma[None, :, None, None] + beta[None, :, None, None]
    if scale_shift is not None:
        scale, shift = scale_shift
        yn = yn * (scale[:, :, None, None] + 1.0) + shift[:, :, None, None]
    return yn * jax.nn.sigmoid(yn)


if __name__ == "__main__":
    key = jax.random.PRNGKey(0)

    # ---- test 1: small shapes, bf16 MXU operands, with scale_shift ----
    B, Cin, Cout, H, W, groups = 2, 8, 32, 16, 16, 8
    k = jax.random.split(key, 7)
    x = jax.random.normal(k[0], (B, Cin, H, W), jnp.float32)
    weight = jax.random.normal(k[1], (Cout, Cin, 3, 3), jnp.float32) * 0.1
    bias = jax.random.normal(k[2], (Cout,), jnp.float32) * 0.1
    gamma = 1.0 + 0.1 * jax.random.normal(k[3], (Cout,), jnp.float32)
    beta = 0.1 * jax.random.normal(k[4], (Cout,), jnp.float32)
    scale = 0.1 * jax.random.normal(k[5], (B, Cout), jnp.float32)
    shift = 0.1 * jax.random.normal(k[6], (B, Cout), jnp.float32)

    out = block_forward(x, weight, bias, gamma, beta, (scale, shift),
                        groups=groups, mm_dtype=jnp.bfloat16)
    out = jax.block_until_ready(out)
    ref = block_forward_ref(x, weight, bias, gamma, beta, (scale, shift),
                            groups=groups)
    assert out.shape == (B, Cout, H, W)
    assert jnp.allclose(out, ref, rtol=5e-2, atol=5e-2), \
        f"bf16 max err = {jnp.max(jnp.abs(out - ref))}"

    # ---- test 2: same shapes, f32 operands, no scale_shift (strict check) ----
    out2 = block_forward(x, weight, bias, gamma, beta, None,
                         groups=groups, mm_dtype=jnp.float32)
    out2 = jax.block_until_ready(out2)
    ref2 = block_forward_ref(x, weight, bias, gamma, beta, None, groups=groups)
    assert jnp.allclose(out2, ref2, rtol=5e-4, atol=5e-4), \
        f"f32 max err = {jnp.max(jnp.abs(out2 - ref2))}"

    # ---- test 3: exercises the 3-tap path, W%8!=0 padding and Cout tiling ----
    B3, Cin3, Cout3, H3, W3, g3 = 1, 48, 512, 8, 12, 8
    k3 = jax.random.split(jax.random.PRNGKey(1), 5)
    x3 = jax.random.normal(k3[0], (B3, Cin3, H3, W3), jnp.float32)
    w3 = jax.random.normal(k3[1], (Cout3, Cin3, 3, 3), jnp.float32) * 0.05
    b3 = 0.1 * jax.random.normal(k3[2], (Cout3,), jnp.float32)
    gm3 = 1.0 + 0.1 * jax.random.normal(k3[3], (Cout3,), jnp.float32)
    bt3 = 0.1 * jax.random.normal(k3[4], (Cout3,), jnp.float32)

    out3 = block_forward(x3, w3, b3, gm3, bt3, None, groups=g3,
                         mm_dtype=jnp.float32)
    out3 = jax.block_until_ready(out3)
    ref3 = block_forward_ref(x3, w3, b3, gm3, bt3, None, groups=g3)
    assert out3.shape == (B3, Cout3, H3, W3)
    assert jnp.allclose(out3, ref3, rtol=5e-4, atol=5e-4), \
        f"tiled max err = {jnp.max(jnp.abs(out3 - ref3))}"

    print("KERNEL_OK")
</pallas_src>

<mosaic_0001>
module attributes {stable_mosaic.version = 11 : i64} {
  func.func @_block_kernel(%arg0: i32, %arg1: i32, %arg2: memref<1x256x72xbf16, #tpu.memory_space<vmem>>, %arg3: memref<1x72x128xbf16, #tpu.memory_space<vmem>>, %arg4: memref<3x128xf32, #tpu.memory_space<vmem>>, %arg5: memref<128x8xf32, #tpu.memory_space<vmem>>, %arg6: memref<8x128xf32, #tpu.memory_space<vmem>>, %arg7: memref<1x256xf32, #tpu.memory_space<vmem>>, %arg8: memref<1x1x128xf32, #tpu.memory_space<vmem>>, %arg9: memref<1x1x128xf32, #tpu.memory_space<vmem>>, %arg10: memref<1x256x128xf32, #tpu.memory_space<vmem>>) attributes {dimension_semantics = [#tpu.dimension_semantics<parallel>, #tpu.dimension_semantics<parallel>], iteration_bounds = array<i64: 2, 1>, scalar_prefetch = 0 : i64, scratch_operands = 0 : i64, tpu.core_type = #tpu.core_type<tc>, window_params = [{transform_indices = @transform_0, window_bounds = array<i64: 1, 256, 72>}, {pipeline_mode = #tpu.pipeline_mode<synchronous>, transform_indices = @transform_1, window_bounds = array<i64: 1, 72, 128>}, {pipeline_mode = #tpu.pipeline_mode<synchronous>, transform_indices = @transform_2, window_bounds = array<i64: 3, 128>}, {pipeline_mode = #tpu.pipeline_mode<synchronous>, transform_indices = @transform_3, window_bounds = array<i64: 128, 8>}, {pipeline_mode = #tpu.pipeline_mode<synchronous>, transform_indices = @transform_4, window_bounds = array<i64: 8, 128>}, {pipeline_mode = #tpu.pipeline_mode<synchronous>, transform_indices = @transform_5, window_bounds = array<i64: 1, 256>}, {transform_indices = @transform_6, window_bounds = array<i64: 1, 1, 128>}, {transform_indices = @transform_7, window_bounds = array<i64: 1, 1, 128>}, {transform_indices = @transform_8, window_bounds = array<i64: 1, 256, 128>}]} {
    %c0 = arith.constant 0 : index
    %c0_0 = arith.constant 0 : index
    %c0_1 = arith.constant 0 : index
    %0 = vector.load %arg2[%c0, %c0_0, %c0_1] : memref<1x256x72xbf16, #tpu.memory_space<vmem>>, vector<1x256x72xbf16>
    %1 = vector.shape_cast %0 : vector<1x256x72xbf16> to vector<256x72xbf16>
    %c0_2 = arith.constant 0 : index
    %c0_3 = arith.constant 0 : index
    %c0_4 = arith.constant 0 : index
    %2 = vector.load %arg3[%c0_2, %c0_3, %c0_4] : memref<1x72x128xbf16, #tpu.memory_space<vmem>>, vector<1x72x128xbf16>
    %3 = vector.shape_cast %2 : vector<1x72x128xbf16> to vector<72x128xbf16>
    %cst = arith.constant dense<0.000000e+00> : vector<256x128xf32>
    %4 = tpu.matmul %1, %3, %cst {dimension_numbers = #tpu.dot_dimension_numbers<[1], [0], [0], [1], [0, 0, 1, 1], [], []>} : vector<256x72xbf16>, vector<72x128xbf16>, vector<256x128xf32> -> vector<256x128xf32>
    %c0_5 = arith.constant 0 : index
    %c0_6 = arith.constant 0 : index
    %5 = vector.load %arg4[%c0_5, %c0_6] : memref<3x128xf32, #tpu.memory_space<vmem>>, vector<1x128xf32>
    %c1 = arith.constant 1 : index
    %c0_7 = arith.constant 0 : index
    %6 = vector.load %arg4[%c1, %c0_7] : memref<3x128xf32, #tpu.memory_space<vmem>>, vector<1x128xf32>
    %c2 = arith.constant 2 : index
    %c0_8 = arith.constant 0 : index
    %7 = vector.load %arg4[%c2, %c0_8] : memref<3x128xf32, #tpu.memory_space<vmem>>, vector<1x128xf32>
    %c0_9 = arith.constant 0 : index
    %c0_10 = arith.constant 0 : index
    %8 = vector.load %arg7[%c0_9, %c0_10] : memref<1x256xf32, #tpu.memory_space<vmem>>, vector<1x256xf32>
    %c0_11 = arith.constant 0 : index
    %c0_12 = arith.constant 0 : index
    %9 = vector.load %arg5[%c0_11, %c0_12] : memref<128x8xf32, #tpu.memory_space<vmem>>, vector<128x8xf32>
    %c0_13 = arith.constant 0 : index
    %c0_14 = arith.constant 0 : index
    %10 = vector.load %arg6[%c0_13, %c0_14] : memref<8x128xf32, #tpu.memory_space<vmem>>, vector<8x128xf32>
    %cst_15 = arith.constant dense<0.000000e+00> : vector<1x128xf32>
    %11 = tpu.matmul %8, %4, %cst_15 {dimension_numbers = #tpu.dot_dimension_numbers<[1], [0], [0], [1], [0, 0, 1, 1], [], []>} : vector<1x256xf32>, vector<256x128xf32>, vector<1x128xf32> -> vector<1x128xf32>
    %cst_16 = arith.constant 2.560000e+02 : f32
    %12 = vector.broadcast %cst_16 : f32 to vector<1x128xf32>
    %13 = arith.mulf %12, %5 : vector<1x128xf32>
    %14 = arith.addf %11, %13 : vector<1x128xf32>
    %cst_17 = arith.constant dense<0.000000e+00> : vector<1x8xf32>
    %15 = tpu.matmul %14, %9, %cst_17 {dimension_numbers = #tpu.dot_dimension_numbers<[1], [0], [0], [1], [0, 0, 1, 1], [], []>} : vector<1x128xf32>, vector<128x8xf32>, vector<1x8xf32> -> vector<1x8xf32>
    %cst_18 = arith.constant 9.765625E-4 : f32
    %16 = vector.broadcast %cst_18 : f32 to vector<1x8xf32>
    %17 = arith.mulf %15, %16 : vector<1x8xf32>
    %cst_19 = arith.constant dense<0.000000e+00> : vector<1x128xf32>
    %18 = tpu.matmul %17, %10, %cst_19 {dimension_numbers = #tpu.dot_dimension_numbers<[1], [0], [0], [1], [0, 0, 1, 1], [], []>} : vector<1x8xf32>, vector<8x128xf32>, vector<1x128xf32> -> vector<1x128xf32>
    %19 = arith.subf %5, %18 : vector<1x128xf32>
    %20 = vector.broadcast %19 : vector<1x128xf32> to vector<256x128xf32>
    %21 = arith.addf %4, %20 : vector<256x128xf32>
    %22 = arith.mulf %21, %21 : vector<256x128xf32>
    %cst_20 = arith.constant dense<0.000000e+00> : vector<1x128xf32>
    %23 = tpu.matmul %8, %22, %cst_20 {dimension_numbers = #tpu.dot_dimension_numbers<[1], [0], [0], [1], [0, 0, 1, 1], [], []>} : vector<1x256xf32>, vector<256x128xf32>, vector<1x128xf32> -> vector<1x128xf32>
    %cst_21 = arith.constant dense<0.000000e+00> : vector<1x8xf32>
    %24 = tpu.matmul %23, %9, %cst_21 {dimension_numbers = #tpu.dot_dimension_numbers<[1], [0], [0], [1], [0, 0, 1, 1], [], []>} : vector<1x128xf32>, vector<128x8xf32>, vector<1x8xf32> -> vector<1x8xf32>
    %cst_22 = arith.constant 9.765625E-4 : f32
    %25 = vector.broadcast %cst_22 : f32 to vector<1x8xf32>
    %26 = arith.mulf %24, %25 : vector<1x8xf32>
    %cst_23 = arith.constant dense<0.000000e+00> : vector<1x128xf32>
    %27 = tpu.matmul %26, %10, %cst_23 {dimension_numbers = #tpu.dot_dimension_numbers<[1], [0], [0], [1], [0, 0, 1, 1], [], []>} : vector<1x8xf32>, vector<8x128xf32>, vector<1x128xf32> -> vector<1x128xf32>
    %cst_24 = arith.constant 9.99999974E-6 : f32
    %28 = vector.broadcast %cst_24 : f32 to vector<1x128xf32>
    %29 = arith.addf %27, %28 : vector<1x128xf32>
    %30 = math.rsqrt %29 : vector<1x128xf32>
    %31 = arith.mulf %6, %30 : vector<1x128xf32>
    %32 = arith.mulf %19, %31 : vector<1x128xf32>
    %33 = arith.addf %32, %7 : vector<1x128xf32>
    %c0_25 = arith.constant 0 : index
    %c0_26 = arith.constant 0 : index
    %c0_27 = arith.constant 0 : index
    %34 = vector.load %arg8[%c0_25, %c0_26, %c0_27] : memref<1x1x128xf32, #tpu.memory_space<vmem>>, vector<1x1x128xf32>
    %35 = vector.shape_cast %34 : vector<1x1x128xf32> to vector<1x128xf32>
    %cst_28 = arith.constant 1.000000e+00 : f32
    %36 = vector.broadcast %cst_28 : f32 to vector<1x128xf32>
    %37 = arith.addf %35, %36 : vector<1x128xf32>
    %38 = arith.mulf %31, %37 : vector<1x128xf32>
    %39 = arith.mulf %33, %37 : vector<1x128xf32>
    %c0_29 = arith.constant 0 : index
    %c0_30 = arith.constant 0 : index
    %c0_31 = arith.constant 0 : index
    %40 = vector.load %arg9[%c0_29, %c0_30, %c0_31] : memref<1x1x128xf32, #tpu.memory_space<vmem>>, vector<1x1x128xf32>
    %41 = vector.shape_cast %40 : vector<1x1x128xf32> to vector<1x128xf32>
    %42 = arith.addf %39, %41 : vector<1x128xf32>
    %43 = vector.broadcast %38 : vector<1x128xf32> to vector<256x128xf32>
    %44 = arith.mulf %4, %43 : vector<256x128xf32>
    %45 = vector.broadcast %42 : vector<1x128xf32> to vector<256x128xf32>
    %46 = arith.addf %44, %45 : vector<256x128xf32>
    %47 = arith.negf %46 : vector<256x128xf32>
    %48 = math.exp %47 : vector<256x128xf32>
    %cst_32 = arith.constant 1.000000e+00 : f32
    %49 = vector.broadcast %cst_32 : f32 to vector<256x128xf32>
    %50 = arith.addf %49, %48 : vector<256x128xf32>
    %51 = arith.divf %49, %50 : vector<256x128xf32>
    %52 = arith.mulf %46, %51 : vector<256x128xf32>
    %53 = vector.shape_cast %52 : vector<256x128xf32> to vector<1x256x128xf32>
    %c0_33 = arith.constant 0 : index
    %c0_34 = arith.constant 0 : index
    %c0_35 = arith.constant 0 : index
    %54 = vector.load %arg10[%c0_33, %c0_34, %c0_35] : memref<1x256x128xf32, #tpu.memory_space<vmem>>, vector<1x256x128xf32>
    tpu.vector_store %arg10[%c0_33, %c0_34, %c0_35], %53 {strides = array<i32>} : memref<1x256x128xf32, #tpu.memory_space<vmem>>, vector<1x256x128xf32>,
    return
  }
  func.func @transform_0(%arg0: i32, %arg1: i32) -> (i32, i32, i32) {
    %c0_i32 = arith.constant 0 : i32
    %c0_i32_0 = arith.constant 0 : i32
    %c0_i32_1 = arith.constant 0 : i32
    return %arg0, %c0_i32, %c0_i32_0 : i32, i32, i32
  }
  func.func @transform_1(%arg0: i32, %arg1: i32) -> (i32, i32, i32) {
    %c0_i32 = arith.constant 0 : i32
    %c0_i32_0 = arith.constant 0 : i32
    %c0_i32_1 = arith.constant 0 : i32
    return %c0_i32, %c0_i32_0, %arg1 : i32, i32, i32
  }
  func.func @transform_2(%arg0: i32, %arg1: i32) -> (i32, i32) {
    %c0_i32 = arith.constant 0 : i32
    %c0_i32_0 = arith.constant 0 : i32
    return %c0_i32, %arg1 : i32, i32
  }
  func.func @transform_3(%arg0: i32, %arg1: i32) -> (i32, i32) {
    %c0_i32 = arith.constant 0 : i32
    %c0_i32_0 = arith.constant 0 : i32
    %c0_i32_1 = arith.constant 0 : i32
    return %c0_i32, %c0_i32_0 : i32, i32
  }
  func.func @transform_4(%arg0: i32, %arg1: i32) -> (i32, i32) {
    %c0_i32 = arith.constant 0 : i32
    %c0_i32_0 = arith.constant 0 : i32
    %c0_i32_1 = arith.constant 0 : i32
    return %c0_i32, %c0_i32_0 : i32, i32
  }
  func.func @transform_5(%arg0: i32, %arg1: i32) -> (i32, i32) {
    %c0_i32 = arith.constant 0 : i32
    %c0_i32_0 = arith.constant 0 : i32
    %c0_i32_1 = arith.constant 0 : i32
    return %c0_i32, %c0_i32_0 : i32, i32
  }
  func.func @transform_6(%arg0: i32, %arg1: i32) -> (i32, i32, i32) {
    %c0_i32 = arith.constant 0 : i32
    %c0_i32_0 = arith.constant 0 : i32
    return %arg0, %c0_i32, %arg1 : i32, i32, i32
  }
  func.func @transform_7(%arg0: i32, %arg1: i32) -> (i32, i32, i32) {
    %c0_i32 = arith.constant 0 : i32
    %c0_i32_0 = arith.constant 0 : i32
    return %arg0, %c0_i32, %arg1 : i32, i32, i32
  }
  func.func @transform_8(%arg0: i32, %arg1: i32) -> (i32, i32, i32) {
    %c0_i32 = arith.constant 0 : i32
    %c0_i32_0 = arith.constant 0 : i32
    return %arg0, %c0_i32, %arg1 : i32, i32, i32
  }
}

module attributes {stable_mosaic.version = 11 : i64} {
  func.func @_block_kernel(%arg0: i32, %arg1: i32, %arg2: memref<1x256x72xbf16, #tpu.memory_space<vmem>>, %arg3: memref<1x72x128xbf16, #tpu.memory_space<vmem>>, %arg4: memref<3x128xf32, #tpu.memory_space<vmem>>, %arg5: memref<128x8xf32, #tpu.memory_space<vmem>>, %arg6: memref<8x128xf32, #tpu.memory_space<vmem>>, %arg7: memref<1x256xf32, #tpu.memory_space<vmem>>, %arg8: memref<1x1x128xf32, #tpu.memory_space<vmem>>, %arg9: memref<1x1x128xf32, #tpu.memory_space<vmem>>, %arg10: memref<1x256x128xf32, #tpu.memory_space<vmem>>) attributes {dimension_semantics = [#tpu.dimension_semantics<parallel>, #tpu.dimension_semantics<parallel>], iteration_bounds = array<i64: 2, 1>, scalar_prefetch = 0 : i64, scratch_operands = 0 : i64, tpu.core_type = #tpu.core_type<tc>, window_params = [{transform_indices = @transform_0, window_bounds = array<i64: 1, 256, 72>}, {transform_indices = @transform_1, window_bounds = array<i64: 1, 72, 128>}, {transform_indices = @transform_2, window_bounds = array<i64: 3, 128>}, {pipeline_mode = #tpu.pipeline_mode<synchronous>, transform_indices = @transform_3, window_bounds = array<i64: 128, 8>}, {pipeline_mode = #tpu.pipeline_mode<synchronous>, transform_indices = @transform_4, window_bounds = array<i64: 8, 128>}, {pipeline_mode = #tpu.pipeline_mode<synchronous>, transform_indices = @transform_5, window_bounds = array<i64: 1, 256>}, {transform_indices = @transform_6, window_bounds = array<i64: 1, 1, 128>}, {transform_indices = @transform_7, window_bounds = array<i64: 1, 1, 128>}, {transform_indices = @transform_8, window_bounds = array<i64: 1, 256, 128>}]} {
    %c0 = arith.constant 0 : index
    %c0_0 = arith.constant 0 : index
    %c0_1 = arith.constant 0 : index
    %0 = vector.load %arg2[%c0, %c0_0, %c0_1] : memref<1x256x72xbf16, #tpu.memory_space<vmem>>, vector<1x256x72xbf16>
    %1 = vector.shape_cast %0 : vector<1x256x72xbf16> to vector<256x72xbf16>
    %c0_2 = arith.constant 0 : index
    %c0_3 = arith.constant 0 : index
    %c0_4 = arith.constant 0 : index
    %2 = vector.load %arg3[%c0_2, %c0_3, %c0_4] : memref<1x72x128xbf16, #tpu.memory_space<vmem>>, vector<1x72x128xbf16>
    %3 = vector.shape_cast %2 : vector<1x72x128xbf16> to vector<72x128xbf16>
    %cst = arith.constant dense<0.000000e+00> : vector<256x128xf32>
    %4 = tpu.matmul %1, %3, %cst {dimension_numbers = #tpu.dot_dimension_numbers<[1], [0], [0], [1], [0, 0, 1, 1], [], []>} : vector<256x72xbf16>, vector<72x128xbf16>, vector<256x128xf32> -> vector<256x128xf32>
    %c0_5 = arith.constant 0 : index
    %c0_6 = arith.constant 0 : index
    %5 = vector.load %arg4[%c0_5, %c0_6] : memref<3x128xf32, #tpu.memory_space<vmem>>, vector<1x128xf32>
    %c1 = arith.constant 1 : index
    %c0_7 = arith.constant 0 : index
    %6 = vector.load %arg4[%c1, %c0_7] : memref<3x128xf32, #tpu.memory_space<vmem>>, vector<1x128xf32>
    %c2 = arith.constant 2 : index
    %c0_8 = arith.constant 0 : index
    %7 = vector.load %arg4[%c2, %c0_8] : memref<3x128xf32, #tpu.memory_space<vmem>>, vector<1x128xf32>
    %c0_9 = arith.constant 0 : index
    %c0_10 = arith.constant 0 : index
    %8 = vector.load %arg7[%c0_9, %c0_10] : memref<1x256xf32, #tpu.memory_space<vmem>>, vector<1x256xf32>
    %c0_11 = arith.constant 0 : index
    %c0_12 = arith.constant 0 : index
    %9 = vector.load %arg5[%c0_11, %c0_12] : memref<128x8xf32, #tpu.memory_space<vmem>>, vector<128x8xf32>
    %c0_13 = arith.constant 0 : index
    %c0_14 = arith.constant 0 : index
    %10 = vector.load %arg6[%c0_13, %c0_14] : memref<8x128xf32, #tpu.memory_space<vmem>>, vector<8x128xf32>
    %cst_15 = arith.constant dense<0.000000e+00> : vector<1x128xf32>
    %11 = tpu.matmul %8, %4, %cst_15 {dimension_numbers = #tpu.dot_dimension_numbers<[1], [0], [0], [1], [0, 0, 1, 1], [], []>} : vector<1x256xf32>, vector<256x128xf32>, vector<1x128xf32> -> vector<1x128xf32>
    %cst_16 = arith.constant 2.560000e+02 : f32
    %12 = vector.broadcast %cst_16 : f32 to vector<1x128xf32>
    %13 = arith.mulf %12, %5 : vector<1x128xf32>
    %14 = arith.addf %11, %13 : vector<1x128xf32>
    %cst_17 = arith.constant dense<0.000000e+00> : vector<1x8xf32>
    %15 = tpu.matmul %14, %9, %cst_17 {dimension_numbers = #tpu.dot_dimension_numbers<[1], [0], [0], [1], [0, 0, 1, 1], [], []>} : vector<1x128xf32>, vector<128x8xf32>, vector<1x8xf32> -> vector<1x8xf32>
    %cst_18 = arith.constant 9.765625E-4 : f32
    %16 = vector.broadcast %cst_18 : f32 to vector<1x8xf32>
    %17 = arith.mulf %15, %16 : vector<1x8xf32>
    %cst_19 = arith.constant dense<0.000000e+00> : vector<1x128xf32>
    %18 = tpu.matmul %17, %10, %cst_19 {dimension_numbers = #tpu.dot_dimension_numbers<[1], [0], [0], [1], [0, 0, 1, 1], [], []>} : vector<1x8xf32>, vector<8x128xf32>, vector<1x128xf32> -> vector<1x128xf32>
    %19 = arith.subf %5, %18 : vector<1x128xf32>
    %20 = vector.broadcast %19 : vector<1x128xf32> to vector<256x128xf32>
    %21 = arith.addf %4, %20 : vector<256x128xf32>
    %22 = arith.mulf %21, %21 : vector<256x128xf32>
    %cst_20 = arith.constant dense<0.000000e+00> : vector<1x128xf32>
    %23 = tpu.matmul %8, %22, %cst_20 {dimension_numbers = #tpu.dot_dimension_numbers<[1], [0], [0], [1], [0, 0, 1, 1], [], []>} : vector<1x256xf32>, vector<256x128xf32>, vector<1x128xf32> -> vector<1x128xf32>
    %cst_21 = arith.constant dense<0.000000e+00> : vector<1x8xf32>
    %24 = tpu.matmul %23, %9, %cst_21 {dimension_numbers = #tpu.dot_dimension_numbers<[1], [0], [0], [1], [0, 0, 1, 1], [], []>} : vector<1x128xf32>, vector<128x8xf32>, vector<1x8xf32> -> vector<1x8xf32>
    %cst_22 = arith.constant 9.765625E-4 : f32
    %25 = vector.broadcast %cst_22 : f32 to vector<1x8xf32>
    %26 = arith.mulf %24, %25 : vector<1x8xf32>
    %cst_23 = arith.constant dense<0.000000e+00> : vector<1x128xf32>
    %27 = tpu.matmul %26, %10, %cst_23 {dimension_numbers = #tpu.dot_dimension_numbers<[1], [0], [0], [1], [0, 0, 1, 1], [], []>} : vector<1x8xf32>, vector<8x128xf32>, vector<1x128xf32> -> vector<1x128xf32>
    %cst_24 = arith.constant 9.99999974E-6 : f32
    %28 = vector.broadcast %cst_24 : f32 to vector<1x128xf32>
    %29 = arith.addf %27, %28 : vector<1x128xf32>
    %30 = math.rsqrt %29 : vector<1x128xf32>
    %31 = arith.mulf %6, %30 : vector<1x128xf32>
    %32 = arith.mulf %19, %31 : vector<1x128xf32>
    %33 = arith.addf %32, %7 : vector<1x128xf32>
    %c0_25 = arith.constant 0 : index
    %c0_26 = arith.constant 0 : index
    %c0_27 = arith.constant 0 : index
    %34 = vector.load %arg8[%c0_25, %c0_26, %c0_27] : memref<1x1x128xf32, #tpu.memory_space<vmem>>, vector<1x1x128xf32>
    %35 = vector.shape_cast %34 : vector<1x1x128xf32> to vector<1x128xf32>
    %cst_28 = arith.constant 1.000000e+00 : f32
    %36 = vector.broadcast %cst_28 : f32 to vector<1x128xf32>
    %37 = arith.addf %35, %36 : vector<1x128xf32>
    %38 = arith.mulf %31, %37 : vector<1x128xf32>
    %39 = arith.mulf %33, %37 : vector<1x128xf32>
    %c0_29 = arith.constant 0 : index
    %c0_30 = arith.constant 0 : index
    %c0_31 = arith.constant 0 : index
    %40 = vector.load %arg9[%c0_29, %c0_30, %c0_31] : memref<1x1x128xf32, #tpu.memory_space<vmem>>, vector<1x1x128xf32>
    %41 = vector.shape_cast %40 : vector<1x1x128xf32> to vector<1x128xf32>
    %42 = arith.addf %39, %41 : vector<1x128xf32>
    %43 = vector.broadcast %38 : vector<1x128xf32> to vector<256x128xf32>
    %44 = arith.mulf %4, %43 : vector<256x128xf32>
    %45 = vector.broadcast %42 : vector<1x128xf32> to vector<256x128xf32>
    %46 = arith.addf %44, %45 : vector<256x128xf32>
    %47 = arith.negf %46 : vector<256x128xf32>
    %48 = math.exp %47 : vector<256x128xf32>
    %cst_32 = arith.constant 1.000000e+00 : f32
    %49 = vector.broadcast %cst_32 : f32 to vector<256x128xf32>
    %50 = arith.addf %49, %48 : vector<256x128xf32>
    %51 = arith.divf %49, %50 : vector<256x128xf32>
    %52 = arith.mulf %46, %51 : vector<256x128xf32>
    %53 = vector.shape_cast %52 : vector<256x128xf32> to vector<1x256x128xf32>
    %c0_33 = arith.constant 0 : index
    %c0_34 = arith.constant 0 : index
    %c0_35 = arith.constant 0 : index
    %54 = vector.load %arg10[%c0_33, %c0_34, %c0_35] : memref<1x256x128xf32, #tpu.memory_space<vmem>>, vector<1x256x128xf32>
    tpu.vector_store %arg10[%c0_33, %c0_34, %c0_35], %53 {strides = array<i32>} : memref<1x256x128xf32, #tpu.memory_space<vmem>>, vector<1x256x128xf32>,
    return
  }
  func.func @transform_0(%arg0: i32, %arg1: i32) -> (i32, i32, i32) {
    %c0_i32 = arith.constant 0 : i32
    %c0_i32_0 = arith.constant 0 : i32
    %c0_i32_1 = arith.constant 0 : i32
    return %arg0, %c0_i32, %c0_i32_0 : i32, i32, i32
  }
  func.func @transform_1(%arg0: i32, %arg1: i32) -> (i32, i32, i32) {
    %c0_i32 = arith.constant 0 : i32
    %c0_i32_0 = arith.constant 0 : i32
    %c0_i32_1 = arith.constant 0 : i32
    return %c0_i32, %c0_i32_0, %arg1 : i32, i32, i32
  }
  func.func @transform_2(%arg0: i32, %arg1: i32) -> (i32, i32) {
    %c0_i32 = arith.constant 0 : i32
    %c0_i32_0 = arith.constant 0 : i32
    return %c0_i32, %arg1 : i32, i32
  }
  func.func @transform_3(%arg0: i32, %arg1: i32) -> (i32, i32) {
    %c0_i32 = arith.constant 0 : i32
    %c0_i32_0 = arith.constant 0 : i32
    %c0_i32_1 = arith.constant 0 : i32
    return %c0_i32, %c0_i32_0 : i32, i32
  }
  func.func @transform_4(%arg0: i32, %arg1: i32) -> (i32, i32) {
    %c0_i32 = arith.constant 0 : i32
    %c0_i32_0 = arith.constant 0 : i32
    %c0_i32_1 = arith.constant 0 : i32
    return %c0_i32, %c0_i32_0 : i32, i32
  }
  func.func @transform_5(%arg0: i32, %arg1: i32) -> (i32, i32) {
    %c0_i32 = arith.constant 0 : i32
    %c0_i32_0 = arith.constant 0 : i32
    %c0_i32_1 = arith.constant 0 : i32
    return %c0_i32, %c0_i32_0 : i32, i32
  }
  func.func @transform_6(%arg0: i32, %arg1: i32) -> (i32, i32, i32) {
    %c0_i32 = arith.constant 0 : i32
    %c0_i32_0 = arith.constant 0 : i32
    return %arg0, %c0_i32, %arg1 : i32, i32, i32
  }
  func.func @transform_7(%arg0: i32, %arg1: i32) -> (i32, i32, i32) {
    %c0_i32 = arith.constant 0 : i32
    %c0_i32_0 = arith.constant 0 : i32
    return %arg0, %c0_i32, %arg1 : i32, i32, i32
  }
  func.func @transform_8(%arg0: i32, %arg1: i32) -> (i32, i32, i32) {
    %c0_i32 = arith.constant 0 : i32
    %c0_i32_0 = arith.constant 0 : i32
    return %arg0, %c0_i32, %arg1 : i32, i32, i32
  }
}

</mosaic_0001>

<bundles_post_ra>
// kernel: tpu_custom_call.1
= control target key start
LH: loop header
LB: loop body
LE: loop exit
PB: predicated region body
PF: predicated region fallthrough
CT: control target
= control target key end

     0   :  { %13 = vsyncpa [#allocation3], 0  ;;  %s3230_s0 = inlined_call_operand.vmem [shape: bf16[2,256,72], index: 0, kind: input, shape index: {}]   ;;  %s3231_s1 = inlined_call_operand.vmem [shape: bf16[1,72,128], index: 1, kind: input, shape index: {}]   ;;  %s3232_s2 = inlined_call_operand.vmem [shape: f32[3,128], index: 2, kind: input, shape index: {}]   ;;  %s3233_s3 = inlined_call_operand.vmem [shape: f32[128,8], index: 3, kind: input, shape index: {}]   ;;  %s3234_s4 = inlined_call_operand.vmem [shape: f32[8,128], index: 4, kind: input, shape index: {}]   ;;  %s3235_s5 = inlined_call_operand.vmem [shape: f32[1,256], index: 5, kind: input, shape index: {}]   ;;  %s3236_s6 = inlined_call_operand.vmem [shape: f32[2,1,128], index: 6, kind: input, shape index: {}]   ;;  %s3237_s7 = inlined_call_operand.vmem [shape: f32[2,1,128], index: 7, kind: input, shape index: {}]   ;;  %s3238_s8 = inlined_call_operand.hbm [shape: f32[2,256,128], index: 8, kind: output, shape index: {}]  }
   0x1   :  { %15 = vsyncpa [#allocation3 + $0x1], 0  ;;  %s2453_s27 = smov 0   ;;  %s2455_s28 = smov 0  }
   0x2   :  { %s2457_s29 = smov 0   ;;  %s2459_s30 = smov 0  }
   0x3   :  { %s2461_s9 = smov 0   ;;  %s2463_s10 = smov 0  }
   0x4 LB: > { %s1775_s11 = sadd.s32 4294967295, %s2401_s10   ;;  %s1776_s12 = sadd.s32 4294967294, %s2401_s10   ;;  %s2401_s10 = sphi %s2463_s10, %s21_s10   ;;  %s2397_s9 = sphi %s2461_s9, %s3248_s9   ;;  %s2393_s30 = sphi %s2459_s30, %s3247_s30   ;;  %s2389_s29 = sphi %s2457_s29, %s3246_s29   ;;  %s2385_s28 = sphi %s2455_s28, %s3245_s28   ;;  %s2381_s27 = sphi %s2453_s27, %s3244_s27  }
   0x5   : > { %s33_s13 = sadd.s32 1, %s2397_s9  ;;  %s239_s14 = sadd.s32 1, %s2389_s29 }
   0x6   : > { %p35_p0 = scmp.ge.s32.totalorder %s33_s13, 2  ;;  %p249_p1 = scmp.ne.s32.totalorder %s2389_s29, %s2385_s28 }
   0x7   : > { %p250_p2 = scmp.eq.s32.totalorder %s1775_s11, 1  ;;  %p255_p3 = scmp.ne.s32.totalorder %s2385_s28, %s2381_s27 }
   0x8   : > { %s3250_s13 = smov (%p35_p0, %s33_s13), 0  ;;  %p256_p5 = scmp.eq.s32.totalorder %s1776_s12, 1 }
   0x9   : > { %p2493_p4 = por %p250_p2, %p249_p1  ;;  %s234_s16 = ssub.s32 %s2397_s9, %s3250_s13 }
   0xa   : > { %p1781_p6 = scmp.ge.s32.totalorder %s2401_s10, 1  ;;  %p237_p7 = scmp.eq.s32.totalorder %s234_s16, 0 }
   0xb   : > { %p2500_p8 = por %p256_p5, %p255_p3  ;;  %p323_p9 = scmp.lt.s32.totalorder %s2401_s10, 3 }
   0xc   : > { %s2506_s18 = scalar_select %p237_p7, %s2389_s29, %s239_s14  }
   0xd   : > { %p324_p10 = pnand %p1781_p6, %p323_p9 }
   0xf   : > { %327 = sbr.rel (%p324_p10) target bundleno = 1663 (0x67f), region = 52 }
  0x14   : > { %v2174_v0 = vld [vmem:[%s3231_s1 + $0x20] ss:$0 sps:$4 sm:$0xff]   ;;  %vm600_vm0 = vcmask 1043456   ;;  %v2175_v1 = vld [vmem:[%s3231_s1 + $0x18] sm:$0xff]   ;;  %p377_p11 = scmp.lt.s32.totalorder %s2393_s30, 1  ;;  %v2176_v3 = vld [vmem:[%s3231_s1 + $0x10] sm:$0xff]   ;;  %v788_v22 = vlaneseq }
  0x15   : > { %2114 = vmatprep.subr.msk.bf16.mxu0 %vm600_vm0, %v2174_v0  ;;  %v602_v2 = vsel %vm600_vm0, %v2174_v0, 0  ;;  %v2177_v4 = vld [vmem:[%s3231_s1 + $0x8] sm:$0xff]   ;;  %vm551_vm1 = vcmask 588800   ;;  %v2178_v6 = vld [vmem:[%s3231_s1] sm:$0xff]   ;;  %v2675_v61 = vld [vmem:[%s3233_s3 + $0x78] sm:$0xff]  ;;  %v2403_v62 = vmov 0.0  }
  0x16   : > { %1993 = vmatpush3.bf16.msra.mxu0 %v602_v2  ;;  %s2519_s25 = scalar_select %p377_p11, %s2393_s30, 1  ;;  %v789_v23 = vshrl.u32 %v788_v22, 7  ;;  %v2568_v25 = vld [vmem:[%s3235_s5] sm:$0x3]  ;;  %v2683_v63 = vld [vmem:[%s3233_s3 + $0x70] sm:$0xff]  ;;  %v2690_v0 = vld [vmem:[%s3233_s3 + $0x68] sm:$0xff] }
  0x17   : > { %1994 = vmatprep.subr.bf16.mxu0 %v2175_v1  ;;  %v2704_v2 = vld [vmem:[%s3233_s3 + $0x58] sm:$0xff]  ;;  %vm2404_vm2 = vmmov 0   ;;  %vm939_vm3 = vcmask 64512   ;;  %s1862_s14 = sshll.u32 %s2393_s30, 12  ;;  %s2405_s23 = smov [#allocation2]  }
  0x18   : > { %s1861_s26 = sshll.u32 %s2519_s25, 7  ;;  %v794_v24 = vsub.s32 1, %v789_v23  ;;  %v2660_v59 = vsub.s32 0, %v789_v23  ;;  %s395_s20 = scalar_lea.vmem %s3236_s6, %s2519_s25 }
  0x19   : > { %s2528_s19 = scalar_lea.vmem %s3230_s0, %s1861_s26  ;;  %s401_s26 = scalar_lea.vmem %s3237_s7, %s2519_s25 }
  0x1a   : > { %1995 = vmatpush3.bf16.msra.mxu0 %v2175_v1  ;;  %v2179_v5 = vld [vmem:[%s2528_s19] sm:$0xff]   ;;  %v2180_v7 = vld [vmem:[%s2528_s19 + $0x8] sm:$0xff]   ;;  %v2181_v8 = vld [vmem:[%s2528_s19 + $0x10] sm:$0xff]   ;;  %v795_v26 = vrot.slane %v2568_v25, %v794_v24  ;;  %v2668_v60 = vrot.slane %v2568_v25, %v2660_v59  ;;  %s374_s25 = sand.u32 1, %s2385_s28   ;;  %s3175_s30 = scalar_lea.hbm %s3238_s8, %s1862_s14 }
  0x1b   : > { %1996 = vmatprep.subr.bf16.mxu0 %v2176_v3  ;;  %2002 = vmatprep.mubr.msk.bf16.mxu0 %vm551_vm1, %v2179_v5  ;;  %v2182_v9 = vld [vmem:[%s2528_s19 + $0x18] sm:$0xff]   ;;  %v2183_v10 = vld [vmem:[%s2528_s19 + $0x20] sm:$0xff]   ;;  %v2184_v11 = vld [vmem:[%s2528_s19 + $0x28] sm:$0xff]   ;;  %s1782_s11 = sshll.u32 %s374_s25, 8  ;;  %s3185_s21 = scalar_lea.sflag [#allocation3], %s374_s25 }
  0x1c   : > { %v2185_v12 = vld [vmem:[%s2528_s19 + $0x30] sm:$0xff]   ;;  %v2186_v13 = vld [vmem:[%s2528_s19 + $0x38] sm:$0xff]   ;;  %v2187_v14 = vld [vmem:[%s2528_s19 + $0x40] sm:$0xff]   ;;  %862 = vmatprep.mubr.f32.mxu1 %v795_v26  ;;  %s3106_s12 = scalar_lea.vmem [#allocation2], %s1782_s11  ;;  %s2329_s24 = sshll.u32 %s2405_s23, 4  ;;  %s2330_s24 = int_to_ptr.vmem [resolvable:$false] %s2329_s24 }
  0x1d   : > { %v2188_v15 = vld [vmem:[%s2528_s19 + $0x48] sm:$0xff]   ;;  %v2189_v16 = vld [vmem:[%s2528_s19 + $0x50] sm:$0xff]   ;;  %v2190_v17 = vld [vmem:[%s2528_s19 + $0x58] sm:$0xff]   ;;  %s1649_s16 = sshll.u32 %s3106_s12, 4  ;;  %s3177_s16 = int_to_ptr.vmem [resolvable:$true] %s1649_s16 }
  0x1e   : > { %1997 = vmatpush3.bf16.msra.mxu0 %v2176_v3  ;;  %v2191_v18 = vld [vmem:[%s2528_s19 + $0x60] sm:$0xff]   ;;  %v2192_v19 = vld [vmem:[%s2528_s19 + $0x68] sm:$0xff]   ;;  %v2193_v20 = vld [vmem:[%s2528_s19 + $0x70] sm:$0xff]   ;;  %s2325_s22 = scalar_lea.vmem %s3177_s16, 4096  ;;  %p2332_p1 = scmp.lt.s32.totalorder %s3177_s16, %s2330_s24 }
  0x1f   : > { %1998 = vmatprep.subr.bf16.mxu0 %v2177_v4  ;;  %v2194_v21 = vld [vmem:[%s2528_s19 + $0x78] sm:$0xff]   ;;  %v2697_v1 = vld [vmem:[%s3233_s3 + $0x60] sm:$0xff]  ;;  %v2711_v3 = vld [vmem:[%s3233_s3 + $0x50] sm:$0xff]  ;;  %p2326_p12 = scmp.ne.s32.totalorder %s3177_s16, %s2325_s22 }
  0x20   : > { %v777_v5 = vld [vmem:[%s3233_s3 + $0x40] sm:$0xff] }
  0x21   : > { %p2327_p13 = pnand %p2326_p12, %p2493_p4 }
  0x22   : > { %1999 = vmatpush3.bf16.msra.mxu0 %v2177_v4  ;;  %v778_v4 = vld [vmem:[%s3233_s3 + $0x48] sm:$0xff] }
  0x23   : > { %2000 = vmatprep.subr.bf16.mxu0 %v2178_v6  ;;  %p2328_p0 = pneg %p2327_p13 }
  0x26   : > { %2001 = vmatpush3.bf16.msra.mxu0 %v2178_v6  ;;  %v776_v6 = vld [vmem:[%s3233_s3 + $0x38] sm:$0xff] }
  0x29   : > { %2003 = vmatmul.mubr.msk.bf16.vlgmr.msra.gmra.mxu0 %vm551_vm1, %v2180_v7  ;;  %v775_v7 = vld [vmem:[%s3233_s3 + $0x30] sm:$0xff] }
  0x2a   : > { %2006 = vmatprep.mubr.msk.bf16.mxu0 %vm551_vm1, %v2181_v8  ;;  %v774_v8 = vld [vmem:[%s3233_s3 + $0x28] sm:$0xff] }
  0x31   : > { %2007 = vmatmul.mubr.msk.bf16.gmra.mxu0 %vm551_vm1, %v2182_v9  ;;  %v773_v9 = vld [vmem:[%s3233_s3 + $0x20] sm:$0xff] }
  0x32   : > { %2010 = vmatprep.mubr.msk.bf16.mxu0 %vm551_vm1, %v2183_v10  ;;  %v772_v10 = vld [vmem:[%s3233_s3 + $0x18] sm:$0xff] }
  0x39   : > { %2011 = vmatmul.mubr.msk.bf16.gmra.mxu0 %vm551_vm1, %v2184_v11  ;;  %v771_v11 = vld [vmem:[%s3233_s3 + $0x10] sm:$0xff] }
  0x3a   : > { %2014 = vmatprep.mubr.msk.bf16.mxu0 %vm551_vm1, %v2185_v12  ;;  %v770_v12 = vld [vmem:[%s3233_s3 + $0x8] sm:$0xff] }
  0x41   : > { %2015 = vmatmul.mubr.msk.bf16.gmra.mxu0 %vm551_vm1, %v2186_v13  ;;  %v769_v13 = vld [vmem:[%s3233_s3] sm:$0xff] }
  0x42   : > { %2018 = vmatprep.mubr.msk.bf16.mxu0 %vm551_vm1, %v2187_v14  ;;  %v765_v14 = vld [vmem:[%s3232_s2] sm:$0x1] }
  0x49   : > { %2019 = vmatmul.mubr.msk.bf16.gmra.mxu0 %vm551_vm1, %v2188_v15 }
  0x4a   : > { %2022 = vmatprep.mubr.msk.bf16.mxu0 %vm551_vm1, %v2189_v16  ;;  %v786_v16 = vmul.f32 256.0, %v765_v14 }
  0x51   : > { %2023 = vmatmul.mubr.msk.bf16.gmra.mxu0 %vm551_vm1, %v2190_v17 }
  0x52   : > { %2026 = vmatprep.mubr.msk.bf16.mxu0 %vm551_vm1, %v2191_v18 }
  0x59   : > { %2027 = vmatmul.mubr.msk.bf16.gmra.mxu0 %vm551_vm1, %v2192_v19 }
  0x5a   : > { %2030 = vmatprep.mubr.msk.bf16.mxu0 %vm551_vm1, %v2193_v20  ;;  %v2767_v20 = vld [vmem:[%s3234_s4] sm:$0xff] }
  0x61   : > { %2031 = vmatmul.mubr.msk.bf16.gmra.mxu0 %vm551_vm1, %v2194_v21 }
  0x62   : > { %1146 = vmatprep.mubr.f32.mxu0 %v795_v26 }
  0xe9   : > { %v2571_v27 = vpop.f32.mrf.mxu0 }
  0xeb   : > { %v2573_v28 = vpop.f32.mrf.mxu0 }
  0xed   : > { %v2575_v29 = vpop.f32.mrf.mxu0 }
  0xef   : > { %v2577_v30 = vpop.f32.mrf.mxu0 }
  0xf1   : > { %v2579_v31 = vpop.f32.mrf.mxu0 }
  0xf3   : > { %v2581_v32 = vpop.f32.mrf.mxu0 }
  0xf5   : > { %v2583_v33 = vpop.f32.mrf.mxu0 }
  0xf7   : > { %v2585_v34 = vpop.f32.mrf.mxu0 }
  0xf9   : > { %v2587_v35 = vpop.f32.mrf.mxu0 }
  0xfb   : > { %v2589_v36 = vpop.f32.mrf.mxu0 }
  0xfd   : > { %v2591_v37 = vpop.f32.mrf.mxu0 }
  0xff   : > { %v2593_v38 = vpop.f32.mrf.mxu0 }
 0x101   : > { %v2595_v39 = vpop.f32.mrf.mxu0 }
 0x103   : > { %v2597_v40 = vpop.f32.mrf.mxu0 }
 0x105   : > { %v2599_v41 = vpop.f32.mrf.mxu0 }
 0x107   : > { %v2601_v42 = vpop.f32.mrf.mxu0 }
 0x109   : > { %v2603_v43 = vpop.f32.mrf.mxu0 }
 0x10b   : > { %v2605_v44 = vpop.f32.mrf.mxu0 }
 0x10d   : > { %v2607_v45 = vpop.f32.mrf.mxu0 }
 0x10f   : > { %v2609_v46 = vpop.f32.mrf.mxu0 }
 0x111   : > { %v2611_v47 = vpop.f32.mrf.mxu0 }
 0x113   : > { %v2613_v48 = vpop.f32.mrf.mxu0 }
 0x115   : > { %v2615_v49 = vpop.f32.mrf.mxu0 }
 0x117   : > { %v2617_v50 = vpop.f32.mrf.mxu0 }
 0x119   : > { %v2619_v51 = vpop.f32.mrf.mxu0 }
 0x11b   : > { %v2621_v52 = vpop.f32.mrf.mxu0 }
 0x11d   : > { %v2623_v53 = vpop.f32.mrf.mxu0 }
 0x11f   : > { %v2625_v54 = vpop.f32.mrf.mxu0 }
 0x121   : > { %v2627_v55 = vpop.f32.mrf.mxu0 }
 0x123   : > { %v2629_v56 = vpop.f32.mrf.mxu0 }
 0x125   : > { %v2631_v57 = vpop.f32.mrf.mxu0 }
 0x126   : > { %1884 = vmatprep.subr.mxu1 %v2631_v57 }
 0x127   : > { %1885 = vmatpush3.msra.mxu1 %v2599_v41  ;;  %v2636_v58 = vpop.f32.mrf.mxu0 }
 0x128   : > { %1886 = vmatprep.subr.mxu1 %v2627_v55 }
 0x129   : > { %1887 = vmatpush3.msra.mxu1 %v2595_v39 }
 0x12a   : > { %1888 = vmatprep.subr.mxu1 %v2636_v58 }
 0x12b   : > { %1889 = vmatpush3.msra.mxu1 %v2601_v42 }
 0x12c   : > { %1890 = vmatprep.subr.mxu1 %v2629_v56 }
 0x12d   : > { %1891 = vmatpush3.msra.mxu1 %v2597_v40 }
 0x12e   : > { %1892 = vmatprep.subr.mxu1 %v2623_v53 }
 0x12f   : > { %1893 = vmatpush3.msra.mxu1 %v2591_v37 }
 0x130   : > { %1894 = vmatprep.subr.mxu1 %v2619_v51 }
 0x131   : > { %1895 = vmatpush3.msra.mxu1 %v2587_v35 }
 0x132   : > { %1896 = vmatprep.subr.mxu1 %v2625_v54 }
 0x133   : > { %1897 = vmatpush3.msra.mxu1 %v2593_v38 }
 0x134   : > { %1898 = vmatprep.subr.mxu1 %v2621_v52 }
 0x135   : > { %1899 = vmatpush3.msra.mxu1 %v2589_v36 }
 0x136   : > { %1900 = vmatprep.subr.mxu1 %v2615_v49 }
 0x137   : > { %1901 = vmatpush3.msra.mxu1 %v2583_v33 }
 0x138   : > { %1902 = vmatprep.subr.mxu1 %v2611_v47 }
 0x139   : > { %1903 = vmatpush3.msra.mxu1 %v2579_v31 }
 0x13a   : > { %1904 = vmatprep.subr.mxu1 %v2617_v50 }
 0x13b   : > { %1905 = vmatpush3.msra.mxu1 %v2585_v34 }
 0x13c   : > { %1906 = vmatprep.subr.mxu1 %v2613_v48 }
 0x13d   : > { %1907 = vmatpush3.msra.mxu1 %v2581_v32 }
 0x13e   : > { %1908 = vmatprep.subr.mxu1 %v2607_v45 }
 0x13f   : > { %1909 = vmatpush3.msra.mxu1 %v2575_v29 }
 0x140   : > { %1910 = vmatprep.subr.mxu1 %v2603_v43 }
 0x141   : > { %1911 = vmatpush3.msra.mxu1 %v2571_v27 }
 0x142   : > { %1912 = vmatprep.subr.mxu1 %v2609_v46 }
 0x143   : > { %1913 = vmatpush3.msra.mxu1 %v2577_v30 }
 0x144   : > { %1914 = vmatprep.subr.mxu1 %v2605_v44 }
 0x145   : > { %1915 = vmatpush3.msra.mxu1 %v2573_v28 }
 0x146   : > { %863 = vmatmul.mubr.f32.vlgmr.msra.gmra.mxu1 %v2668_v60  ;;  %2034 = vmatprep.subr.mxu1 %v2403_v62 }
 0x147   : > { %2035 = vmatpush3.msra.mxu1 %v2675_v61  ;;  %2066 = vmatprep.mubr.msk.f32.mxu1 %vm2404_vm2, %v2403_v62 }
 0x148   : > { %2036 = vmatprep.subr.mxu1 %v2403_v62 }
 0x149   : > { %2037 = vmatpush3.msra.mxu1 %v2683_v63 }
 0x14a   : > { %2038 = vmatprep.subr.mxu1 %v2403_v62 }
 0x14b   : > { %2039 = vmatpush3.msra.mxu1 %v2690_v0 }
 0x14c   : > { %2040 = vmatprep.subr.mxu1 %v2403_v62 }
 0x14d   : > { %2041 = vmatpush3.msra.mxu1 %v2697_v1 }
 0x14e   : > { %2042 = vmatprep.subr.mxu1 %v2403_v62 }
 0x14f   : > { %2043 = vmatpush3.msra.mxu1 %v2704_v2 }
 0x150   : > { %2044 = vmatprep.subr.mxu1 %v2403_v62 }
 0x151   : > { %2045 = vmatpush3.msra.mxu1 %v2711_v3 }
 0x152   : > { %2046 = vmatprep.subr.mxu1 %v2403_v62 }
 0x153   : > { %2047 = vmatpush3.msra.mxu1 %v778_v4 }
 0x154   : > { %2048 = vmatprep.subr.mxu1 %v2403_v62 }
 0x155   : > { %2049 = vmatpush3.msra.mxu1 %v777_v5 }
 0x156   : > { %2050 = vmatprep.subr.mxu1 %v2403_v62 }
 0x157   : > { %2051 = vmatpush3.msra.mxu1 %v776_v6 }
 0x158   : > { %2052 = vmatprep.subr.mxu1 %v2403_v62 }
 0x159   : > { %2053 = vmatpush3.msra.mxu1 %v775_v7 }
 0x15a   : > { %2054 = vmatprep.subr.mxu1 %v2403_v62 }
 0x15b   : > { %2055 = vmatpush3.msra.mxu1 %v774_v8 }
 0x15c   : > { %2056 = vmatprep.subr.mxu1 %v2403_v62 }
 0x15d   : > { %2057 = vmatpush3.msra.mxu1 %v773_v9 }
 0x15e   : > { %2058 = vmatprep.subr.mxu1 %v2403_v62 }
 0x15f   : > { %2059 = vmatpush3.msra.mxu1 %v772_v10 }
 0x160   : > { %2060 = vmatprep.subr.mxu1 %v2403_v62 }
 0x161   : > { %2061 = vmatpush3.msra.mxu1 %v771_v11 }
 0x162   : > { %2062 = vmatprep.subr.mxu1 %v2403_v62 }
 0x163   : > { %2063 = vmatpush3.msra.mxu1 %v770_v12 }
 0x164   : > { %2064 = vmatprep.subr.mxu1 %v2403_v62 }
 0x165   : > { %2065 = vmatpush3.msra.mxu1 %v769_v13 }
 0x166   : > { %2069 = vmatprep.subr.mxu1 %v2403_v62 }
 0x206   : > { %v1916_v15 = vpop.f32.mrf.mxu1 }
 0x208   : > { %v1917_v17 = vpop.f32.mrf.mxu1 }
 0x209   : > { %v1918_v18 = vadd.f32 %v1917_v17, %v1916_v15 }
 0x20b   : > { %v865_v19 = vadd.f32 %v1918_v18, %v786_v16 }
 0x20d   : > { %2067 = vmatmul.mubr.f32.vlgmr.msra.gmra.mxu1 %v865_v19 }
 0x20e   : > { %2071 = vmatprep.mubr.msk.f32.mxu1 %vm2404_vm2, %v2403_v62  ;;  %2070 = vmatpush3.msra.mxu1 %v2767_v20 }
 0x20f   : > { %2074 = vmatprep.subr.mxu1 %v2403_v62 }
 0x2cd   : > { %v934_v21 = vpop.f32.mrf.mxu1 }
 0x2ce   : > { %v938_v22 = vmul.f32 0.0009765625, %v934_v21 }
 0x2cf   : > { %v2068_v23 = vpop.f32.mrf.mxu1 }
 0x2d0   : > { %2072 = vmatmul.mubr.msk.f32.vlgmr.msra.gmra.mxu1 %vm939_vm3, %v938_v22 }
 0x2d1   : > { %2075 = vmatpush3.msra.mxu1 %v2675_v61  ;;  %2106 = vmatprep.mubr.msk.f32.mxu1 %vm2404_vm2, %v2403_v62 }
 0x2d2   : > { %2076 = vmatprep.subr.mxu1 %v2403_v62 }
 0x2d3   : > { %2077 = vmatpush3.msra.mxu1 %v2683_v63 }
 0x2d4   : > { %2078 = vmatprep.subr.mxu1 %v2403_v62 }
 0x2d5   : > { %2079 = vmatpush3.msra.mxu1 %v2690_v0 }
 0x2d6   : > { %2080 = vmatprep.subr.mxu1 %v2403_v62 }
 0x2d7   : > { %2081 = vmatpush3.msra.mxu1 %v2697_v1 }
 0x2d8   : > { %2082 = vmatprep.subr.mxu1 %v2403_v62 }
 0x2d9   : > { %2083 = vmatpush3.msra.mxu1 %v2704_v2 }
 0x2da   : > { %2084 = vmatprep.subr.mxu1 %v2403_v62 }
 0x2db   : > { %2085 = vmatpush3.msra.mxu1 %v2711_v3 }
 0x2dc   : > { %2086 = vmatprep.subr.mxu1 %v2403_v62 }
 0x2dd   : > { %2087 = vmatpush3.msra.mxu1 %v778_v4 }
 0x2de   : > { %2088 = vmatprep.subr.mxu1 %v2403_v62 }
 0x2df   : > { %2089 = vmatpush3.msra.mxu1 %v777_v5 }
 0x2e0   : > { %2090 = vmatprep.subr.mxu1 %v2403_v62 }
 0x2e1   : > { %2091 = vmatpush3.msra.mxu1 %v776_v6 }
 0x2e2   : > { %2092 = vmatprep.subr.mxu1 %v2403_v62 }
 0x2e3   : > { %2093 = vmatpush3.msra.mxu1 %v775_v7 }
 0x2e4   : > { %2094 = vmatprep.subr.mxu1 %v2403_v62 }
 0x2e5   : > { %2095 = vmatpush3.msra.mxu1 %v774_v8 }
 0x2e6   : > { %2096 = vmatprep.subr.mxu1 %v2403_v62 }
 0x2e7   : > { %2097 = vmatpush3.msra.mxu1 %v773_v9 }
 0x2e8   : > { %2098 = vmatprep.subr.mxu1 %v2403_v62 }
 0x2e9   : > { %2099 = vmatpush3.msra.mxu1 %v772_v10 }
 0x2ea   : > { %2100 = vmatprep.subr.mxu1 %v2403_v62 }
 0x2eb   : > { %2101 = vmatpush3.msra.mxu1 %v771_v11 }
 0x2ec   : > { %2102 = vmatprep.subr.mxu1 %v2403_v62 }
 0x2ed   : > { %2103 = vmatpush3.msra.mxu1 %v770_v12 }
 0x2ee   : > { %2104 = vmatprep.subr.mxu1 %v2403_v62 }
 0x2ef   : > { %2105 = vmatpush3.msra.mxu1 %v769_v13 }
 0x390   : > { %v1009_v24 = vpop.f32.mrf.mxu1 }
 0x391   : > { %v2795_v26 = vsub.f32 %v765_v14, %v1009_v24 }
 0x392   : > { %v2073_v25 = vpop.f32.mrf.mxu1 }
 0x393   : > { %v2799_v61 = vrot.slane %v2795_v26, %v2660_v59 }
 0x395   : > { %v1033_v63 = vadd.f32 %v2599_v41, %v2799_v61  ;;  %v1049_v0 = vadd.f32 %v2631_v57, %v2799_v61  ;;  %v1048_v1 = vadd.f32 %v2627_v55, %v2799_v61  ;;  %v1032_v2 = vadd.f32 %v2595_v39, %v2799_v61 }
 0x396   : > { %v1047_v4 = vadd.f32 %v2799_v61, %v2636_v58  ;;  %v1031_v6 = vadd.f32 %v2799_v61, %v2601_v42  ;;  %v1046_v7 = vadd.f32 %v2799_v61, %v2629_v56  ;;  %v1030_v9 = vadd.f32 %v2799_v61, %v2597_v40 }
 0x397   : > { %v1065_v3 = vmul.f32 %v1033_v63, %v1033_v63  ;;  %v1081_v5 = vmul.f32 %v1049_v0, %v1049_v0  ;;  %v1080_v8 = vmul.f32 %v1048_v1, %v1048_v1  ;;  %v1064_v10 = vmul.f32 %v1032_v2, %v1032_v2 }
 0x398   : > { %v1045_v11 = vadd.f32 %v2623_v53, %v2799_v61  ;;  %v1079_v12 = vmul.f32 %v1047_v4, %v1047_v4  ;;  %v1029_v13 = vadd.f32 %v2591_v37, %v2799_v61  ;;  %v1063_v14 = vmul.f32 %v1031_v6, %v1031_v6 }
 0x399   : > { %1938 = vmatprep.subr.mxu0 %v1081_v5  ;;  %v1044_v15 = vadd.f32 %v2619_v51, %v2799_v61  ;;  %v1078_v16 = vmul.f32 %v1046_v7, %v1046_v7  ;;  %v1028_v17 = vadd.f32 %v2587_v35, %v2799_v61  ;;  %v1062_v18 = vmul.f32 %v1030_v9, %v1030_v9 }
 0x39a   : > { %1939 = vmatpush3.msra.mxu0 %v1065_v3  ;;  %v1043_v19 = vadd.f32 %v2799_v61, %v2625_v54  ;;  %v1077_v21 = vmul.f32 %v1045_v11, %v1045_v11  ;;  %v1027_v22 = vadd.f32 %v2799_v61, %v2593_v38  ;;  %v1061_v23 = vmul.f32 %v1029_v13, %v1029_v13 }
 0x39b   : > { %1940 = vmatprep.subr.mxu0 %v1080_v8  ;;  %v1042_v24 = vadd.f32 %v2799_v61, %v2621_v52  ;;  %v1076_v25 = vmul.f32 %v1044_v15, %v1044_v15  ;;  %v1026_v63 = vadd.f32 %v2799_v61, %v2589_v36  ;;  %v1060_v0 = vmul.f32 %v1028_v17, %v1028_v17 }
 0x39c   : > { %1941 = vmatpush3.msra.mxu0 %v1064_v10  ;;  %v1041_v1 = vadd.f32 %v2615_v49, %v2799_v61  ;;  %v1075_v2 = vmul.f32 %v1043_v19, %v1043_v19  ;;  %v1025_v3 = vadd.f32 %v2583_v33, %v2799_v61  ;;  %v1059_v4 = vmul.f32 %v1027_v22, %v1027_v22 }
 0x39d   : > { %1942 = vmatprep.subr.mxu0 %v1079_v12  ;;  %v1040_v5 = vadd.f32 %v2611_v47, %v2799_v61  ;;  %v1074_v6 = vmul.f32 %v1042_v24, %v1042_v24  ;;  %v1024_v7 = vadd.f32 %v2579_v31, %v2799_v61  ;;  %v1058_v8 = vmul.f32 %v1026_v63, %v1026_v63 }
 0x39e   : > { %1943 = vmatpush3.msra.mxu0 %v1063_v14  ;;  %v1039_v9 = vadd.f32 %v2799_v61, %v2617_v50  ;;  %v1073_v10 = vmul.f32 %v1041_v1, %v1041_v1  ;;  %v1023_v11 = vadd.f32 %v2799_v61, %v2585_v34  ;;  %v1057_v12 = vmul.f32 %v1025_v3, %v1025_v3 }
 0x39f   : > { %1944 = vmatprep.subr.mxu0 %v1078_v16  ;;  %v1038_v13 = vadd.f32 %v2799_v61, %v2613_v48  ;;  %v1072_v14 = vmul.f32 %v1040_v5, %v1040_v5  ;;  %v1022_v15 = vadd.f32 %v2799_v61, %v2581_v32  ;;  %v1056_v16 = vmul.f32 %v1024_v7, %v1024_v7 }
 0x3a0   : > { %1945 = vmatpush3.msra.mxu0 %v1062_v18  ;;  %v1037_v17 = vadd.f32 %v2607_v45, %v2799_v61  ;;  %v1071_v18 = vmul.f32 %v1039_v9, %v1039_v9  ;;  %v1021_v19 = vadd.f32 %v2575_v29, %v2799_v61  ;;  %v1036_v22 = vadd.f32 %v2603_v43, %v2799_v61 }
 0x3a1   : > { %1946 = vmatprep.subr.mxu0 %v1077_v21  ;;  %v1055_v21 = vmul.f32 %v1023_v11, %v1023_v11  ;;  %v1020_v24 = vadd.f32 %v2571_v27, %v2799_v61  ;;  %v1035_v63 = vadd.f32 %v2799_v61, %v2609_v46  ;;  %v1019_v1 = vadd.f32 %v2799_v61, %v2577_v30 }
 0x3a2   : > { %1947 = vmatpush3.msra.mxu0 %v1061_v23  ;;  %v1070_v23 = vmul.f32 %v1038_v13, %v1038_v13  ;;  %v1034_v3 = vadd.f32 %v2799_v61, %v2605_v44  ;;  %v1018_v5 = vadd.f32 %v2799_v61, %v2573_v28 }
 0x3a3   : > { %1948 = vmatprep.subr.mxu0 %v1076_v25  ;;  %v1054_v25 = vmul.f32 %v1022_v15, %v1022_v15  ;;  %v1067_v7 = vmul.f32 %v1035_v63, %v1035_v63  ;;  %v1304_v63 = vld [vmem:[%s401_s26] sm:$0x1]  ;;  %s2331_s26 = scalar_lea.vmem %s2330_s24, 8192 }
 0x3a4   : > { %1949 = vmatpush3.msra.mxu0 %v1060_v0  ;;  %v1069_v0 = vmul.f32 %v1037_v17, %v1037_v17  ;;  %v1066_v9 = vmul.f32 %v1034_v3, %v1034_v3  ;;  %p2333_p2 = scmp.lt.s32.totalorder %s2331_s26, %s2325_s22 }
 0x3a5   : > { %1950 = vmatprep.subr.mxu0 %v1075_v2  ;;  %v1053_v2 = vmul.f32 %v1021_v19, %v1021_v19  ;;  %v767_v19 = vld [vmem:[%s3232_s2 + $0x2] sm:$0x1] }
 0x3a6   : > { %1951 = vmatpush3.msra.mxu0 %v1059_v4  ;;  %v1068_v4 = vmul.f32 %v1036_v22, %v1036_v22  ;;  %p2334_p3 = por %p2333_p2, %p2332_p1 }
 0x3a7   : > { %1952 = vmatprep.subr.mxu0 %v1074_v6  ;;  %v1052_v6 = vmul.f32 %v1020_v24, %v1020_v24 }
 0x3a8   : > { %1953 = vmatpush3.msra.mxu0 %v1058_v8  ;;  %v1051_v8 = vmul.f32 %v1019_v1, %v1019_v1  ;;  %p2335_p5 = pnand %p2334_p3, %p2328_p0 }
 0x3a9   : > { %1954 = vmatprep.subr.mxu0 %v1073_v10  ;;  %v1050_v10 = vmul.f32 %v1018_v5, %v1018_v5 }
 0x3aa   : > { %1955 = vmatpush3.msra.mxu0 %v1057_v12 }
 0x3ab   : > { %1956 = vmatprep.subr.mxu0 %v1072_v14 }
 0x3ac   : > { %1957 = vmatpush3.msra.mxu0 %v1056_v16 }
 0x3ad   : > { %1958 = vmatprep.subr.mxu0 %v1071_v18 }
 0x3ae   : > { %1959 = vmatpush3.msra.mxu0 %v1055_v21  ;;  %v1300_v21 = vld [vmem:[%s395_s20] sm:$0x1] }
 0x3af   : > { %1960 = vmatprep.subr.mxu0 %v1070_v23  ;;  %v1301_v24 = vadd.f32 1.0, %v1300_v21 }
 0x3b0   : > { %1961 = vmatpush3.msra.mxu0 %v1054_v25 }
 0x3b1   : > { %1962 = vmatprep.subr.mxu0 %v1069_v0 }
 0x3b2   : > { %1963 = vmatpush3.msra.mxu0 %v1053_v2 }
 0x3b3   : > { %1964 = vmatprep.subr.mxu0 %v1068_v4 }
 0x3b4   : > { %1965 = vmatpush3.msra.mxu0 %v1052_v6 }
 0x3b5   : > { %1966 = vmatprep.subr.mxu0 %v1067_v7 }
 0x3b6   : > { %1967 = vmatpush3.msra.mxu0 %v1051_v8 }
 0x3b7   : > { %1968 = vmatprep.subr.mxu0 %v1066_v9 }
 0x3b8   : > { %1969 = vmatpush3.msra.mxu0 %v1050_v10 }
 0x3b9   : > { %1147 = vmatmul.mubr.f32.vlgmr.msra.gmra.mxu0 %v2668_v60  ;;  %2109 = vmatprep.subr.mxu0 %v2403_v62 }
 0x3ba   : > { %2110 = vmatpush3.msra.mxu0 %v2767_v20  ;;  %2111 = vmatprep.mubr.msk.f32.mxu0 %vm2404_vm2, %v2403_v62  ;;  %v766_v20 = vld [vmem:[%s3232_s2 + $0x1] sm:$0x1] }
 0x479   : > { %v1970_v61 = vpop.f32.mrf.mxu0 }
 0x47b   : > { %v1971_v11 = vpop.f32.mrf.mxu0 }
 0x47c   : > { %v1972_v12 = vadd.f32 %v1971_v11, %v1970_v61 }
 0x47e   : > { %2107 = vmatmul.mubr.f32.vlgmr.msra.gmra.mxu1 %v1972_v12 }
 0x53e   : > { %v1218_v13 = vpop.f32.mrf.mxu1 }
 0x53f   : > { %v1222_v14 = vmul.f32 0.0009765625, %v1218_v13 }
 0x540   : > { %v2108_v15 = vpop.f32.mrf.mxu1 }
 0x541   : > { %2112 = vmatmul.mubr.msk.f32.vlgmr.msra.gmra.mxu0 %vm939_vm3, %v1222_v14 }
 0x601   : > { %v1292_v16 = vpop.f32.mrf.mxu0 }
 0x602   : > { %v1293_v60 = vadd.f32 1e-05, %v1292_v16 }
 0x603   : > { %v2113_v17 = vpop.f32.mrf.mxu0 }
 0x604   : > { %2195 = vrsqrt.f32 %v1293_v60 }
 0x611   : > { %v2196_v62 = vpop.eup %2195 }
 0x612   : > { %v1297_v18 = vmul.f32 %v2196_v62, %v766_v20 }
 0x614   : > { %v1298_v22 = vmul.f32 %v1297_v18, %v2795_v26  ;;  %v1302_v0 = vmul.f32 %v1301_v24, %v1297_v18 }
 0x616   : > { %v1299_v23 = vadd.f32 %v1298_v22, %v767_v19  ;;  %v2887_v2 = vrot.slane %v1302_v0, %v2660_v59 }
 0x618   : > { %v1303_v25 = vmul.f32 %v1301_v24, %v1299_v23  ;;  %v1310_v4 = vmul.f32 %v2887_v2, %v2573_v28  ;;  %v1311_v26 = vmul.f32 %v2887_v2, %v2577_v30  ;;  %v1312_v5 = vmul.f32 %v2571_v27, %v2887_v2 }
 0x619   : > { %v1313_v6 = vmul.f32 %v2575_v29, %v2887_v2  ;;  %v1314_v7 = vmul.f32 %v2887_v2, %v2581_v32  ;;  %v1316_v29 = vmul.f32 %v2579_v31, %v2887_v2  ;;  %v1317_v9 = vmul.f32 %v2583_v33, %v2887_v2 }
 0x61a   : > { %v1305_v1 = vadd.f32 %v1304_v63, %v1303_v25  ;;  %v1318_v10 = vmul.f32 %v2887_v2, %v2589_v36  ;;  %v1319_v61 = vmul.f32 %v2887_v2, %v2593_v38  ;;  %v1320_v36 = vmul.f32 %v2587_v35, %v2887_v2 }
 0x61b   : > { %v1321_v16 = vmul.f32 %v2591_v37, %v2887_v2  ;;  %v1322_v20 = vmul.f32 %v2887_v2, %v2597_v40  ;;  %v1323_v18 = vmul.f32 %v2887_v2, %v2601_v42  ;;  %v1324_v21 = vmul.f32 %v2595_v39, %v2887_v2 }
 0x61c   : > { %v2890_v3 = vrot.slane %v1305_v1, %v2660_v59  ;;  %v1315_v59 = vmul.f32 %v2887_v2, %v2585_v34  ;;  %v1325_v23 = vmul.f32 %v2599_v41, %v2887_v2  ;;  %v1326_v25 = vmul.f32 %v2887_v2, %v2605_v44 }
 0x61d   : > { %v1327_v0 = vmul.f32 %v2887_v2, %v2609_v46 }
 0x61e   : > { %v2903_v8 = vadd.f32 %v2890_v3, %v1310_v4  ;;  %v2908_v28 = vadd.f32 %v2890_v3, %v1311_v26  ;;  %v2911_v30 = vadd.f32 %v2890_v3, %v1312_v5  ;;  %v2914_v27 = vadd.f32 %v2890_v3, %v1313_v6 }
 0x61f   : > { %v2919_v32 = vadd.f32 %v2890_v3, %v1314_v7  ;;  %v2924_v34 = vadd.f32 %v2890_v3, %v1315_v59  ;;  %v2931_v11 = vadd.f32 %v2890_v3, %v1316_v29  ;;  %v2935_v12 = vadd.f32 %v2890_v3, %v1317_v9 }
 0x620   : > { %v1824_v31 = vmul.f32 -1.442695, %v2903_v8  ;;  %v1825_v13 = vmul.f32 -1.442695, %v2908_v28  ;;  %v1826_v33 = vmul.f32 -1.442695, %v2911_v30  ;;  %v2943_v15 = vadd.f32 %v2890_v3, %v1318_v10 }
 0x621   : > { %v1827_v14 = vmul.f32 -1.442695, %v2914_v27  ;;  %v1828_v38 = vmul.f32 -1.442695, %v2919_v32  ;;  %v2949_v60 = vadd.f32 %v2890_v3, %v1319_v61  ;;  %v1829_v17 = vmul.f32 -1.442695, %v2924_v34 }
 0x622   : > { %2197 = vpow2.f32 %v1824_v31  ;;  %v2955_v35 = vadd.f32 %v2890_v3, %v1320_v36  ;;  %v1830_v62 = vmul.f32 -1.442695, %v2931_v11  ;;  %v2961_v37 = vadd.f32 %v2890_v3, %v1321_v16 }
 0x623   : > { %2199 = vpow2.f32 %v1825_v13  ;;  %v1831_v19 = vmul.f32 -1.442695, %v2935_v12  ;;  %v2967_v40 = vadd.f32 %v2890_v3, %v1322_v20  ;;  %v1832_v22 = vmul.f32 -1.442695, %v2943_v15 }
 0x624   : > { %2201 = vpow2.f32 %v1826_v33  ;;  %v2973_v42 = vadd.f32 %v2890_v3, %v1323_v18  ;;  %v1833_v24 = vmul.f32 -1.442695, %v2949_v60  ;;  %v2979_v39 = vadd.f32 %v2890_v3, %v1324_v21 }
 0x625   : > { %2203 = vpow2.f32 %v1827_v14  ;;  %v1834_v63 = vmul.f32 -1.442695, %v2955_v35  ;;  %v2985_v41 = vadd.f32 %v2890_v3, %v1325_v23  ;;  %v1835_v1 = vmul.f32 -1.442695, %v2961_v37 }
 0x626   : > { %2205 = vpow2.f32 %v1828_v38  ;;  %v1328_v4 = vmul.f32 %v2603_v43, %v2887_v2  ;;  %v2991_v44 = vadd.f32 %v2890_v3, %v1326_v25  ;;  %v1836_v26 = vmul.f32 -1.442695, %v2967_v40 }
 0x627   : > { %2207 = vpow2.f32 %v1829_v17  ;;  %v1329_v5 = vmul.f32 %v2607_v45, %v2887_v2  ;;  %v2997_v46 = vadd.f32 %v2890_v3, %v1327_v0  ;;  %v1837_v6 = vmul.f32 -1.442695, %v2973_v42 }
 0x628   : > { %2209 = vpow2.f32 %v1830_v62  ;;  %v1330_v7 = vmul.f32 %v2887_v2, %v2613_v48  ;;  %v3003_v43 = vadd.f32 %v2890_v3, %v1328_v4  ;;  %v1838_v59 = vmul.f32 -1.442695, %v2979_v39 }
 0x629   : > { %2211 = vpow2.f32 %v1831_v19  ;;  %v1331_v29 = vmul.f32 %v2887_v2, %v2617_v50  ;;  %v3009_v45 = vadd.f32 %v2890_v3, %v1329_v5  ;;  %v1839_v9 = vmul.f32 -1.442695, %v2985_v41 }
 0x62a   : > { %2213 = vpow2.f32 %v1832_v22  ;;  %v1332_v10 = vmul.f32 %v2611_v47, %v2887_v2  ;;  %v3015_v48 = vadd.f32 %v2890_v3, %v1330_v7  ;;  %v1840_v61 = vmul.f32 -1.442695, %v2991_v44 }
 0x62b   : > { %2215 = vpow2.f32 %v1833_v24  ;;  %v1333_v50 = vmul.f32 %v2615_v49, %v2887_v2  ;;  %v3023_v13 = vadd.f32 %v2890_v3, %v1331_v29  ;;  %v1841_v33 = vmul.f32 -1.442695, %v2997_v46 }
 0x62c   : > { %2217 = vpow2.f32 %v1834_v63  ;;  %v1334_v47 = vmul.f32 %v2887_v2, %v2621_v52  ;;  %v3031_v36 = vadd.f32 %v2890_v3, %v1332_v10  ;;  %v1842_v38 = vmul.f32 -1.442695, %v3003_v43 }
 0x62d   : > { %2219 = vpow2.f32 %v1835_v1  ;;  %v1335_v49 = vmul.f32 %v2887_v2, %v2625_v54  ;;  %v3037_v17 = vadd.f32 %v2890_v3, %v1333_v50  ;;  %v1843_v20 = vmul.f32 -1.442695, %v3009_v45 }
 0x62e   : > { %2221 = vpow2.f32 %v1836_v26  ;;  %v1336_v52 = vmul.f32 %v2619_v51, %v2887_v2  ;;  %v3043_v18 = vadd.f32 %v2890_v3, %v1334_v47  ;;  %v1844_v19 = vmul.f32 -1.442695, %v3015_v48 }
 0x62f   : > { %v3018_v31 = vpop.eup %2197  ;;  %2223 = vpow2.f32 %v1837_v6  ;;  %v1337_v54 = vmul.f32 %v2623_v53, %v2887_v2  ;;  %v3049_v22 = vadd.f32 %v2890_v3, %v1335_v49  ;;  %v1845_v23 = vmul.f32 -1.442695, %v3023_v13 }
 0x630   : > { %v3026_v14 = vpop.eup %2199  ;;  %2225 = vpow2.f32 %v1838_v59  ;;  %v1338_v51 = vmul.f32 %v2887_v2, %v2629_v56  ;;  %v3055_v25 = vadd.f32 %v2890_v3, %v1336_v52  ;;  %v1846_v63 = vmul.f32 -1.442695, %v3031_v36 }
 0x631   : > { %v2202_v16 = vpop.eup %2201  ;;  %2227 = vpow2.f32 %v1839_v9  ;;  %v1339_v53 = vmul.f32 %v2887_v2, %v2636_v58  ;;  %v3061_v1 = vadd.f32 %v2890_v3, %v1337_v54  ;;  %v1847_v4 = vmul.f32 -1.442695, %v3037_v17 }
 0x632   : > { %v2204_v62 = vpop.eup %2203  ;;  %2229 = vpow2.f32 %v1840_v61  ;;  %v1340_v56 = vmul.f32 %v2627_v55, %v2887_v2  ;;  %v3067_v5 = vadd.f32 %v2890_v3, %v1338_v51  ;;  %v1848_v6 = vmul.f32 -1.442695, %v3043_v18 }
 0x633   : > { %v2206_v21 = vpop.eup %2205  ;;  %2231 = vpow2.f32 %v1841_v33  ;;  %v1341_v58 = vmul.f32 %v2631_v57, %v2887_v2  ;;  %v3073_v59 = vadd.f32 %v2890_v3, %v1339_v53  ;;  %v1849_v29 = vmul.f32 -1.442695, %v3049_v22 }
 0x634   : > { %v2208_v24 = vpop.eup %2207  ;;  %2233 = vpow2.f32 %v1842_v38  ;;  %v3077_v10 = vadd.f32 %v2890_v3, %v1340_v56  ;;  %v1850_v55 = vmul.f32 -1.442695, %v3055_v25  ;;  %v1851_v57 = vmul.f32 -1.442695, %v3061_v1 }
 0x635   : > { %v2210_v0 = vpop.eup %2209  ;;  %2235 = vpow2.f32 %v1843_v20  ;;  %v3081_v50 = vadd.f32 %v2890_v3, %v1341_v58  ;;  %v1852_v33 = vmul.f32 -1.442695, %v3067_v5  ;;  %v1853_v38 = vmul.f32 -1.442695, %v3073_v59 }
 0x636   : > { %v2212_v26 = vpop.eup %2211  ;;  %2237 = vpow2.f32 %v1844_v19  ;;  %v1854_v20 = vmul.f32 -1.442695, %v3077_v10  ;;  %v1474_v54 = vadd.f32 1.0, %v3018_v31  ;;  %v1475_v51 = vadd.f32 1.0, %v3026_v14 }
 0x637   : > { %v2214_v7 = vpop.eup %2213  ;;  %2239 = vpow2.f32 %v1845_v23  ;;  %3242 = vst [vmem:[#allocation5_spill] sm:$0xff] %v3081_v50  ;;  %v1855_v3 = vmul.f32 -1.442695, %v3081_v50  ;;  %v1476_v53 = vadd.f32 1.0, %v2202_v16  ;;  %v1477_v56 = vadd.f32 1.0, %v2204_v62 }
 0x638   : > { %v2216_v9 = vpop.eup %2215  ;;  %2241 = vpow2.f32 %v1846_v63  ;;  %v1478_v58 = vadd.f32 1.0, %v2206_v21  ;;  %v1482_v50 = vadd.f32 1.0, %v2214_v7 }
 0x639   : > { %v2218_v61 = vpop.eup %2217  ;;  %2243 = vpow2.f32 %v1847_v4 }
 0x63a   : > { %v2220_v2 = vpop.eup %2219  ;;  %2245 = vpow2.f32 %v1848_v6  ;;  %v1484_v21 = vadd.f32 1.0, %v2218_v61 }
 0x63b   : > { %v2222_v47 = vpop.eup %2221  ;;  %2247 = vpow2.f32 %v1849_v29 }
 0x63c   : > { %v2224_v49 = vpop.eup %2223  ;;  %2249 = vpow2.f32 %v1850_v55  ;;  %v1479_v55 = vadd.f32 1.0, %v2208_v24  ;;  %v1485_v24 = vadd.f32 1.0, %v2220_v2 }
 0x63d   : > { %v2226_v52 = vpop.eup %2225  ;;  %2251 = vpow2.f32 %v1851_v57 }
 0x63e   : > { %v2228_v19 = vpop.eup %2227  ;;  %2253 = vpow2.f32 %v1852_v33  ;;  %v1480_v33 = vadd.f32 1.0, %v2210_v0  ;;  %v1486_v0 = vadd.f32 1.0, %v2222_v47 }
 0x63f   : > { %v2230_v23 = vpop.eup %2229  ;;  %2255 = vpow2.f32 %v1853_v38  ;;  %v1481_v38 = vadd.f32 1.0, %v2212_v26 }
 0x640   : > { %v2232_v63 = vpop.eup %2231  ;;  %2257 = vpow2.f32 %v1854_v20  ;;  %v1483_v20 = vadd.f32 1.0, %v2216_v9  ;;  %v1488_v9 = vadd.f32 1.0, %v2226_v52 }
 0x641   : > { %v2234_v4 = vpop.eup %2233  ;;  %2259 = vpow2.f32 %v1855_v3 }
 0x642   : > { %v2236_v6 = vpop.eup %2235  ;;  %2261 = vrcp.f32 %v1474_v54 }
 0x643   : > { %v2238_v29 = vpop.eup %2237  ;;  %2263 = vrcp.f32 %v1475_v51  ;;  %v1487_v51 = vadd.f32 1.0, %v2224_v49  ;;  %v1492_v49 = vadd.f32 1.0, %v2234_v4 }
 0x644   : > { %v2240_v57 = vpop.eup %2239  ;;  %2265 = vrcp.f32 %v1476_v53  ;;  %v1489_v53 = vadd.f32 1.0, %v2228_v19  ;;  %v1494_v19 = vadd.f32 1.0, %v2238_v29 }
 0x645   : > { %v2242_v31 = vpop.eup %2241  ;;  %2267 = vrcp.f32 %v1477_v56  ;;  %v1490_v56 = vadd.f32 1.0, %v2230_v23 }
 0x646   : > { %v2244_v14 = vpop.eup %2243  ;;  %2269 = vrcp.f32 %v1478_v58  ;;  %v1496_v4 = vadd.f32 1.0, %v2242_v31 }
 0x647   : > { %v2246_v16 = vpop.eup %2245  ;;  %2271 = vrcp.f32 %v1479_v55  ;;  %v1497_v29 = vadd.f32 1.0, %v2244_v14 }
 0x648   : > { %v2248_v62 = vpop.eup %2247  ;;  %2273 = vrcp.f32 %v1480_v33 }
 0x649   : > { %v2250_v3 = vpop.eup %2249  ;;  %2275 = vrcp.f32 %v1481_v38  ;;  %v1493_v38 = vadd.f32 1.0, %v2236_v6 }
 0x64a   : > { %v3091_v54 = vpop.eup %2251  ;;  %2277 = vrcp.f32 %v1482_v50  ;;  %v1491_v50 = vadd.f32 1.0, %v2232_v63  ;;  %v1495_v63 = vadd.f32 1.0, %v2240_v57 }
 0x64b   : > { %v3093_v26 = vpop.eup %2253  ;;  %2279 = vrcp.f32 %v1483_v20 }
 0x64c   : > { %v3095_v7 = vpop.eup %2255  ;;  %2281 = vrcp.f32 %v1484_v21 }
 0x64d   : > { %v3099_v61 = vpop.eup %2257  ;;  %2283 = vrcp.f32 %v1485_v24 }
 0x64e   : > { %v3101_v2 = vpop.eup %2259  ;;  %2285 = vrcp.f32 %v1486_v0  ;;  %v1498_v0 = vadd.f32 1.0, %v2246_v16 }
 0x64f   : > { %v2262_v47 = vpop.eup %2261  ;;  %2287 = vrcp.f32 %v1487_v51  ;;  %v1499_v51 = vadd.f32 1.0, %v2248_v62 }
 0x650   : > { %v2264_v58 = vpop.eup %2263  ;;  %2289 = vrcp.f32 %v1488_v9  ;;  %v1570_v55 = vmul.f32 %v2262_v47, %v2903_v8  ;;  %v1500_v9 = vadd.f32 1.0, %v2250_v3 }
 0x651   : > { %v2266_v33 = vpop.eup %2265  ;;  %2291 = vrcp.f32 %v1489_v53  ;;  %v1571_v52 = vmul.f32 %v2264_v58, %v2908_v28  ;;  %v1501_v53 = vadd.f32 1.0, %v3091_v54 }
 0x652   : > { %v2268_v20 = vpop.eup %2267  ;;  %2293 = vrcp.f32 %v1490_v56  ;;  %v1572_v21 = vmul.f32 %v2266_v33, %v2911_v30  ;;  %1602 = vst [vmem:[%s3106_s12] sm:$0xff] %v1570_v55 }
 0x653   : > { %v2270_v23 = vpop.eup %2269  ;;  %2295 = vrcp.f32 %v1491_v50  ;;  %v1573_v8 = vmul.f32 %v2268_v20, %v2914_v27  ;;  %1603 = vst [vmem:[%s3106_s12 + $0x8] sm:$0xff] %v1571_v52 }
 0x654   : > { %v2272_v28 = vpop.eup %2271  ;;  %2297 = vrcp.f32 %v1492_v49  ;;  %v1574_v6 = vmul.f32 %v2270_v23, %v2919_v32  ;;  %1604 = vst [vmem:[%s3106_s12 + $0x10] sm:$0xff] %v1572_v21 }
 0x655   : > { %v2274_v30 = vpop.eup %2273  ;;  %2299 = vrcp.f32 %v1493_v38  ;;  %v1575_v24 = vmul.f32 %v2272_v28, %v2924_v34  ;;  %1605 = vst [vmem:[%s3106_s12 + $0x18] sm:$0xff] %v1573_v8 }
 0x656   : > { %v2276_v57 = vpop.eup %2275  ;;  %2301 = vrcp.f32 %v1494_v19  ;;  %v1576_v27 = vmul.f32 %v2274_v30, %v2931_v11  ;;  %1606 = vst [vmem:[%s3106_s12 + $0x20] sm:$0xff] %v1574_v6 }
 0x657   : > { %v2278_v31 = vpop.eup %2277  ;;  %2303 = vrcp.f32 %v1495_v63  ;;  %v1577_v32 = vmul.f32 %v2276_v57, %v2935_v12  ;;  %1607 = vst [vmem:[%s3106_s12 + $0x28] sm:$0xff] %v1575_v24  ;;  %v1502_v12 = vadd.f32 1.0, %v3093_v26 }
 0x658   : > { %v2280_v14 = vpop.eup %2279  ;;  %2305 = vrcp.f32 %v1496_v4  ;;  %v1578_v34 = vmul.f32 %v2278_v31, %v2943_v15  ;;  %1608 = vst [vmem:[%s3106_s12 + $0x30] sm:$0xff] %v1576_v27  ;;  %v1503_v15 = vadd.f32 1.0, %v3095_v7 }
 0x659   : > { %v2282_v16 = vpop.eup %2281  ;;  %2307 = vrcp.f32 %v1497_v29  ;;  %v1579_v11 = vmul.f32 %v2280_v14, %v2949_v60  ;;  %1609 = vst [vmem:[%s3106_s12 + $0x38] sm:$0xff] %v1577_v32  ;;  %v1504_v60 = vadd.f32 1.0, %v3099_v61 }
 0x65a   : > { %v2284_v62 = vpop.eup %2283  ;;  %2309 = vrcp.f32 %v1498_v0  ;;  %v1580_v56 = vmul.f32 %v2282_v16, %v2955_v35  ;;  %1610 = vst [vmem:[%s3106_s12 + $0x40] sm:$0xff] %v1578_v34  ;;  %v1505_v35 = vadd.f32 1.0, %v3101_v2 }
 0x65b   : > { %v2286_v3 = vpop.eup %2285  ;;  %2311 = vrcp.f32 %v1499_v51  ;;  %v1581_v54 = vmul.f32 %v2284_v62, %v2961_v37  ;;  %1611 = vst [vmem:[%s3106_s12 + $0x48] sm:$0xff] %v1579_v11 }
 0x65c   : > { %v2288_v47 = vpop.eup %2287  ;;  %2313 = vrcp.f32 %v1500_v9  ;;  %v1582_v26 = vmul.f32 %v2286_v3, %v2967_v40  ;;  %1612 = vst [vmem:[%s3106_s12 + $0x50] sm:$0xff] %v1580_v56 }
 0x65d   : > { %v2290_v50 = vpop.eup %2289  ;;  %2315 = vrcp.f32 %v1501_v53  ;;  %v1583_v7 = vmul.f32 %v2288_v47, %v2973_v42  ;;  %1613 = vst [vmem:[%s3106_s12 + $0x58] sm:$0xff] %v1581_v54 }
 0x65e   : > { %v2292_v58 = vpop.eup %2291  ;;  %2317 = vrcp.f32 %v1502_v12  ;;  %v1584_v37 = vmul.f32 %v2290_v50, %v2979_v39  ;;  %1614 = vst [vmem:[%s3106_s12 + $0x60] sm:$0xff] %v1582_v26 }
 0x65f   : > { %v2294_v61 = vpop.eup %2293  ;;  %2319 = vrcp.f32 %v1503_v15  ;;  %v1585_v40 = vmul.f32 %v2292_v58, %v2985_v41  ;;  %1615 = vst [vmem:[%s3106_s12 + $0x68] sm:$0xff] %v1583_v7 }
 0x660   : > { %v2296_v49 = vpop.eup %2295  ;;  %2321 = vrcp.f32 %v1504_v60  ;;  %v1586_v2 = vmul.f32 %v2294_v61, %v2991_v44  ;;  %1616 = vst [vmem:[%s3106_s12 + $0x70] sm:$0xff] %v1584_v37 }
 0x661   : > { %v2298_v42 = vpop.eup %2297  ;;  %2323 = vrcp.f32 %v1505_v35  ;;  %v1587_v55 = vmul.f32 %v2296_v49, %v2997_v46  ;;  %1617 = vst [vmem:[%s3106_s12 + $0x78] sm:$0xff] %v1585_v40 }
 0x662   : > { %v2300_v39 = vpop.eup %2299  ;;  %v1588_v33 = vmul.f32 %v2298_v42, %v3003_v43  ;;  %1618 = vst [vmem:[%s3106_s12 + $0x80] sm:$0xff] %v1586_v2 }
 0x663   : > { %v2302_v41 = vpop.eup %2301  ;;  %v1589_v38 = vmul.f32 %v2300_v39, %v3009_v45  ;;  %1619 = vst [vmem:[%s3106_s12 + $0x88] sm:$0xff] %v1587_v55 }
 0x664   : > { %v2304_v52 = vpop.eup %2303  ;;  %v1590_v44 = vmul.f32 %v2302_v41, %v3015_v48  ;;  %1620 = vst [vmem:[%s3106_s12 + $0x90] sm:$0xff] %v1588_v33 }
 0x665   : > { %v2306_v20 = vpop.eup %2305  ;;  %v1591_v46 = vmul.f32 %v2304_v52, %v3023_v13  ;;  %1621 = vst [vmem:[%s3106_s12 + $0x98] sm:$0xff] %v1589_v38 }
 0x666   : > { %v2308_v19 = vpop.eup %2307  ;;  %v1592_v43 = vmul.f32 %v2306_v20, %v3031_v36  ;;  %1622 = vst [vmem:[%s3106_s12 + $0xa0] sm:$0xff] %v1590_v44 }
 0x667   : > { %v2310_v21 = vpop.eup %2309  ;;  %v1593_v45 = vmul.f32 %v2308_v19, %v3037_v17  ;;  %1623 = vst [vmem:[%s3106_s12 + $0xa8] sm:$0xff] %v1591_v46 }
 0x668   : > { %v2312_v23 = vpop.eup %2311  ;;  %v1594_v48 = vmul.f32 %v2310_v21, %v3043_v18  ;;  %1624 = vst [vmem:[%s3106_s12 + $0xb0] sm:$0xff] %v1592_v43 }
 0x669   : > { %v2314_v63 = vpop.eup %2313  ;;  %v1595_v13 = vmul.f32 %v2312_v23, %v3049_v22  ;;  %1625 = vst [vmem:[%s3106_s12 + $0xb8] sm:$0xff] %v1593_v45 }
 0x66a   : > { %v2316_v8 = vpop.eup %2315  ;;  %v1596_v36 = vmul.f32 %v2314_v63, %v3055_v25  ;;  %1626 = vst [vmem:[%s3106_s12 + $0xc0] sm:$0xff] %v1594_v48 }
 0x66b   : > { %v2318_v28 = vpop.eup %2317  ;;  %v1597_v4 = vmul.f32 %v2316_v8, %v3061_v1  ;;  %1627 = vst [vmem:[%s3106_s12 + $0xc8] sm:$0xff] %v1595_v13  ;;  %v3243_v1 = vld [vmem:[#allocation5_spill] sm:$0xff] }
 0x66c   : > { %v2320_v17 = vpop.eup %2319  ;;  %v1598_v18 = vmul.f32 %v2318_v28, %v3067_v5  ;;  %1628 = vst [vmem:[%s3106_s12 + $0xd0] sm:$0xff] %v1596_v36 }
 0x66d   : > { %v2322_v22 = vpop.eup %2321  ;;  %v1599_v6 = vmul.f32 %v2320_v17, %v3073_v59  ;;  %1629 = vst [vmem:[%s3106_s12 + $0xd8] sm:$0xff] %v1597_v4 }
 0x66e   : > { %v2324_v25 = vpop.eup %2323  ;;  %v1600_v30 = vmul.f32 %v2322_v22, %v3077_v10  ;;  %1630 = vst [vmem:[%s3106_s12 + $0xe0] sm:$0xff] %v1598_v18 }
 0x66f   : > { %v1601_v5 = vmul.f32 %v2324_v25, %v3243_v1  ;;  %1631 = vst [vmem:[%s3106_s12 + $0xe8] sm:$0xff] %v1599_v6 }
 0x670   : > { %1632 = vst [vmem:[%s3106_s12 + $0xf0] sm:$0xff] %v1600_v30 }
 0x671   : > { %1633 = vst [vmem:[%s3106_s12 + $0xf8] sm:$0xff] %v1601_v5 }
 0x672   : > { %2338 = shalt.err (!%p2335_p5)
}
 0x673   : > { %s2339_s25 = scalar_lea.hbm %s3175_s30, 4096  ;;  %s2343_s14 = scalar_lea.hbm %s3238_s8, 8192 }
 0x674   : > { %p2340_p6 = scmp.ne.s32.totalorder %s3175_s30, %s2339_s25  ;;  %p2344_p10 = scmp.lt.s32.totalorder %s3175_s30, %s3238_s8 }
 0x675   : > { %p2345_p11 = scmp.lt.s32.totalorder %s2343_s14, %s2339_s25 }
 0x676   : > { %p2341_p7 = pnand %p2340_p6, %p2493_p4 }
 0x677   : > { %p2346_p12 = por %p2345_p11, %p2344_p10 }
 0x678   : > { %p2342_p9 = pneg %p2341_p7 }
 0x67a   : > { %p2347_p13 = pnand %p2346_p12, %p2342_p9 }
 0x67c   : > { %2350 = shalt.err (!%p2347_p13)
}
 0x67d   : > { %s2406_s22 = smov 128   ;;  %s2407_s23 = smov 8  }
 0x67e   : > { %2115 = dma.vmem_to_hbm [thread:$0]  (%p2493_p4), %s3177_s16, 4096, %s3175_s30, %s3185_s21, %s2406_s22, %s2406_s22, %s2407_s23  }
 0x67f PF: > { %p2121_p0 = scmp.ge.s32.totalorder %s2401_s10, 2  ;;  %s1664_s24 = sand.u32 1, %s2381_s27  }
 0x680   : > { %s1665_s26 = scalar_lea.sflag [#allocation3], %s1664_s24 }
 0x681   : > { %p2118_p1 = pnand %p2121_p0, %p2500_p8 }
 0x683   : > { %p2119_p2 = pneg %p2118_p1 }
 0x685   : > { %2376 = dma.done.wait (%p2119_p2), %s1665_s26, 4096  }
 0x686   : > { %2378 = vsyncadd (%p2119_p2), %s1665_s26, 4294963200  ;;  %s21_s10 = sadd.s32 1, %s2401_s10   ;;  %s3244_s27 = smov %s2385_s28 }
 0x687   : > { %p18_p3 = scmp.ge.s32.totalorder %s21_s10, 4   ;;  %s3245_s28 = smov %s2389_s29 }
 0x688   : > { %s3246_s29 = smov %s2506_s18  ;;  %s3247_s30 = smov %s2397_s9 }
 0x689   : > { %s3248_s9 = smov %s3250_s13  ;;  %20 = sbr.rel (!%p18_p3) target bundleno = 4 (0x4), region = 99 }
 0x68e   :  { %1670 = vsyncpa [#allocation3], 1 }
 0x68f   :  { %1672 = vsyncpa [#allocation3 + $0x1], 1 }

// kernel: tpu_custom_call.1
= control target key start
LH: loop header
LB: loop body
LE: loop exit
PB: predicated region body
PF: predicated region fallthrough
CT: control target
= control target key end

     0   :  { %13 = vsyncpa [#allocation3], 0  ;;  %s3230_s0 = inlined_call_operand.vmem [shape: bf16[2,256,72], index: 0, kind: input, shape index: {}]   ;;  %s3231_s1 = inlined_call_operand.vmem [shape: bf16[1,72,128], index: 1, kind: input, shape index: {}]   ;;  %s3232_s2 = inlined_call_operand.vmem [shape: f32[3,128], index: 2, kind: input, shape index: {}]   ;;  %s3233_s3 = inlined_call_operand.vmem [shape: f32[128,8], index: 3, kind: input, shape index: {}]   ;;  %s3234_s4 = inlined_call_operand.vmem [shape: f32[8,128], index: 4, kind: input, shape index: {}]   ;;  %s3235_s5 = inlined_call_operand.vmem [shape: f32[1,256], index: 5, kind: input, shape index: {}]   ;;  %s3236_s6 = inlined_call_operand.vmem [shape: f32[2,1,128], index: 6, kind: input, shape index: {}]   ;;  %s3237_s7 = inlined_call_operand.vmem [shape: f32[2,1,128], index: 7, kind: input, shape index: {}]   ;;  %s3238_s8 = inlined_call_operand.hbm [shape: f32[2,256,128], index: 8, kind: output, shape index: {}]  }
   0x1   :  { %15 = vsyncpa [#allocation3 + $0x1], 0  ;;  %s2453_s27 = smov 0   ;;  %s2455_s28 = smov 0  }
   0x2   :  { %s2457_s29 = smov 0   ;;  %s2459_s30 = smov 0  }
   0x3   :  { %s2461_s9 = smov 0   ;;  %s2463_s10 = smov 0  }
   0x4 LB: > { %s1775_s11 = sadd.s32 4294967295, %s2401_s10   ;;  %s1776_s12 = sadd.s32 4294967294, %s2401_s10   ;;  %s2401_s10 = sphi %s2463_s10, %s21_s10   ;;  %s2397_s9 = sphi %s2461_s9, %s3248_s9   ;;  %s2393_s30 = sphi %s2459_s30, %s3247_s30   ;;  %s2389_s29 = sphi %s2457_s29, %s3246_s29   ;;  %s2385_s28 = sphi %s2455_s28, %s3245_s28   ;;  %s2381_s27 = sphi %s2453_s27, %s3244_s27  }
   0x5   : > { %s33_s13 = sadd.s32 1, %s2397_s9  ;;  %s239_s14 = sadd.s32 1, %s2389_s29 }
   0x6   : > { %p35_p0 = scmp.ge.s32.totalorder %s33_s13, 2  ;;  %p249_p1 = scmp.ne.s32.totalorder %s2389_s29, %s2385_s28 }
   0x7   : > { %p250_p2 = scmp.eq.s32.totalorder %s1775_s11, 1  ;;  %p255_p3 = scmp.ne.s32.totalorder %s2385_s28, %s2381_s27 }
   0x8   : > { %s3250_s13 = smov (%p35_p0, %s33_s13), 0  ;;  %p256_p5 = scmp.eq.s32.totalorder %s1776_s12, 1 }
   0x9   : > { %p2493_p4 = por %p250_p2, %p249_p1  ;;  %s234_s16 = ssub.s32 %s2397_s9, %s3250_s13 }
   0xa   : > { %p1781_p6 = scmp.ge.s32.totalorder %s2401_s10, 1  ;;  %p237_p7 = scmp.eq.s32.totalorder %s234_s16, 0 }
   0xb   : > { %p2500_p8 = por %p256_p5, %p255_p3  ;;  %p323_p9 = scmp.lt.s32.totalorder %s2401_s10, 3 }
   0xc   : > { %s2506_s18 = scalar_select %p237_p7, %s2389_s29, %s239_s14  }
   0xd   : > { %p324_p10 = pnand %p1781_p6, %p323_p9 }
   0xf   : > { %327 = sbr.rel (%p324_p10) target bundleno = 1663 (0x67f), region = 52 }
  0x14   : > { %v2174_v0 = vld [vmem:[%s3231_s1 + $0x20] ss:$0 sps:$4 sm:$0xff]   ;;  %vm600_vm0 = vcmask 1043456   ;;  %v2175_v1 = vld [vmem:[%s3231_s1 + $0x18] sm:$0xff]   ;;  %p377_p11 = scmp.lt.s32.totalorder %s2393_s30, 1  ;;  %v2176_v3 = vld [vmem:[%s3231_s1 + $0x10] sm:$0xff]   ;;  %v788_v22 = vlaneseq }
  0x15   : > { %2114 = vmatprep.subr.msk.bf16.mxu0 %vm600_vm0, %v2174_v0  ;;  %v602_v2 = vsel %vm600_vm0, %v2174_v0, 0  ;;  %v2177_v4 = vld [vmem:[%s3231_s1 + $0x8] sm:$0xff]   ;;  %vm551_vm1 = vcmask 588800   ;;  %v2178_v6 = vld [vmem:[%s3231_s1] sm:$0xff]   ;;  %v2675_v61 = vld [vmem:[%s3233_s3 + $0x78] sm:$0xff]  ;;  %v2403_v62 = vmov 0.0  }
  0x16   : > { %1993 = vmatpush3.bf16.msra.mxu0 %v602_v2  ;;  %s2519_s25 = scalar_select %p377_p11, %s2393_s30, 1  ;;  %v789_v23 = vshrl.u32 %v788_v22, 7  ;;  %v2568_v25 = vld [vmem:[%s3235_s5] sm:$0x3]  ;;  %v2683_v63 = vld [vmem:[%s3233_s3 + $0x70] sm:$0xff]  ;;  %v2690_v0 = vld [vmem:[%s3233_s3 + $0x68] sm:$0xff] }
  0x17   : > { %1994 = vmatprep.subr.bf16.mxu0 %v2175_v1  ;;  %v2704_v2 = vld [vmem:[%s3233_s3 + $0x58] sm:$0xff]  ;;  %vm2404_vm2 = vmmov 0   ;;  %vm939_vm3 = vcmask 64512   ;;  %s1862_s14 = sshll.u32 %s2393_s30, 12  ;;  %s2405_s23 = smov [#allocation2]  }
  0x18   : > { %s1861_s26 = sshll.u32 %s2519_s25, 7  ;;  %v794_v24 = vsub.s32 1, %v789_v23  ;;  %v2660_v59 = vsub.s32 0, %v789_v23  ;;  %s395_s20 = scalar_lea.vmem %s3236_s6, %s2519_s25 }
  0x19   : > { %s2528_s19 = scalar_lea.vmem %s3230_s0, %s1861_s26  ;;  %s401_s26 = scalar_lea.vmem %s3237_s7, %s2519_s25 }
  0x1a   : > { %1995 = vmatpush3.bf16.msra.mxu0 %v2175_v1  ;;  %v2179_v5 = vld [vmem:[%s2528_s19] sm:$0xff]   ;;  %v2180_v7 = vld [vmem:[%s2528_s19 + $0x8] sm:$0xff]   ;;  %v2181_v8 = vld [vmem:[%s2528_s19 + $0x10] sm:$0xff]   ;;  %v795_v26 = vrot.slane %v2568_v25, %v794_v24  ;;  %v2668_v60 = vrot.slane %v2568_v25, %v2660_v59  ;;  %s374_s25 = sand.u32 1, %s2385_s28   ;;  %s3175_s30 = scalar_lea.hbm %s3238_s8, %s1862_s14 }
  0x1b   : > { %1996 = vmatprep.subr.bf16.mxu0 %v2176_v3  ;;  %2002 = vmatprep.mubr.msk.bf16.mxu0 %vm551_vm1, %v2179_v5  ;;  %v2182_v9 = vld [vmem:[%s2528_s19 + $0x18] sm:$0xff]   ;;  %v2183_v10 = vld [vmem:[%s2528_s19 + $0x20] sm:$0xff]   ;;  %v2184_v11 = vld [vmem:[%s2528_s19 + $0x28] sm:$0xff]   ;;  %s1782_s11 = sshll.u32 %s374_s25, 8  ;;  %s3185_s21 = scalar_lea.sflag [#allocation3], %s374_s25 }
  0x1c   : > { %v2185_v12 = vld [vmem:[%s2528_s19 + $0x30] sm:$0xff]   ;;  %v2186_v13 = vld [vmem:[%s2528_s19 + $0x38] sm:$0xff]   ;;  %v2187_v14 = vld [vmem:[%s2528_s19 + $0x40] sm:$0xff]   ;;  %862 = vmatprep.mubr.f32.mxu1 %v795_v26  ;;  %s3106_s12 = scalar_lea.vmem [#allocation2], %s1782_s11  ;;  %s2329_s24 = sshll.u32 %s2405_s23, 4  ;;  %s2330_s24 = int_to_ptr.vmem [resolvable:$false] %s2329_s24 }
  0x1d   : > { %v2188_v15 = vld [vmem:[%s2528_s19 + $0x48] sm:$0xff]   ;;  %v2189_v16 = vld [vmem:[%s2528_s19 + $0x50] sm:$0xff]   ;;  %v2190_v17 = vld [vmem:[%s2528_s19 + $0x58] sm:$0xff]   ;;  %s1649_s16 = sshll.u32 %s3106_s12, 4  ;;  %s3177_s16 = int_to_ptr.vmem [resolvable:$true] %s1649_s16 }
  0x1e   : > { %1997 = vmatpush3.bf16.msra.mxu0 %v2176_v3  ;;  %v2191_v18 = vld [vmem:[%s2528_s19 + $0x60] sm:$0xff]   ;;  %v2192_v19 = vld [vmem:[%s2528_s19 + $0x68] sm:$0xff]   ;;  %v2193_v20 = vld [vmem:[%s2528_s19 + $0x70] sm:$0xff]   ;;  %s2325_s22 = scalar_lea.vmem %s3177_s16, 4096  ;;  %p2332_p1 = scmp.lt.s32.totalorder %s3177_s16, %s2330_s24 }
  0x1f   : > { %1998 = vmatprep.subr.bf16.mxu0 %v2177_v4  ;;  %v2194_v21 = vld [vmem:[%s2528_s19 + $0x78] sm:$0xff]   ;;  %v2697_v1 = vld [vmem:[%s3233_s3 + $0x60] sm:$0xff]  ;;  %v2711_v3 = vld [vmem:[%s3233_s3 + $0x50] sm:$0xff]  ;;  %p2326_p12 = scmp.ne.s32.totalorder %s3177_s16, %s2325_s22 }
  0x20   : > { %v777_v5 = vld [vmem:[%s3233_s3 + $0x40] sm:$0xff] }
  0x21   : > { %p2327_p13 = pnand %p2326_p12, %p2493_p4 }
  0x22   : > { %1999 = vmatpush3.bf16.msra.mxu0 %v2177_v4  ;;  %v778_v4 = vld [vmem:[%s3233_s3 + $0x48] sm:$0xff] }
  0x23   : > { %2000 = vmatprep.subr.bf16.mxu0 %v2178_v6  ;;  %p2328_p0 = pneg %p2327_p13 }
  0x26   : > { %2001 = vmatpush3.bf16.msra.mxu0 %v2178_v6  ;;  %v776_v6 = vld [vmem:[%s3233_s3 + $0x38] sm:$0xff] }
  0x29   : > { %2003 = vmatmul.mubr.msk.bf16.vlgmr.msra.gmra.mxu0 %vm551_vm1, %v2180_v7  ;;  %v775_v7 = vld [vmem:[%s3233_s3 + $0x30] sm:$0xff] }
  0x2a   : > { %2006 = vmatprep.mubr.msk.bf16.mxu0 %vm551_vm1, %v2181_v8  ;;  %v774_v8 = vld [vmem:[%s3233_s3 + $0x28] sm:$0xff] }
  0x31   : > { %2007 = vmatmul.mubr.msk.bf16.gmra.mxu0 %vm551_vm1, %v2182_v9  ;;  %v773_v9 = vld [vmem:[%s3233_s3 + $0x20] sm:$0xff] }
  0x32   : > { %2010 = vmatprep.mubr.msk.bf16.mxu0 %vm551_vm1, %v2183_v10  ;;  %v772_v10 = vld [vmem:[%s3233_s3 + $0x18] sm:$0xff] }
  0x39   : > { %2011 = vmatmul.mubr.msk.bf16.gmra.mxu0 %vm551_vm1, %v2184_v11  ;;  %v771_v11 = vld [vmem:[%s3233_s3 + $0x10] sm:$0xff] }
  0x3a   : > { %2014 = vmatprep.mubr.msk.bf16.mxu0 %vm551_vm1, %v2185_v12  ;;  %v770_v12 = vld [vmem:[%s3233_s3 + $0x8] sm:$0xff] }
  0x41   : > { %2015 = vmatmul.mubr.msk.bf16.gmra.mxu0 %vm551_vm1, %v2186_v13  ;;  %v769_v13 = vld [vmem:[%s3233_s3] sm:$0xff] }
  0x42   : > { %2018 = vmatprep.mubr.msk.bf16.mxu0 %vm551_vm1, %v2187_v14  ;;  %v765_v14 = vld [vmem:[%s3232_s2] sm:$0x1] }
  0x49   : > { %2019 = vmatmul.mubr.msk.bf16.gmra.mxu0 %vm551_vm1, %v2188_v15 }
  0x4a   : > { %2022 = vmatprep.mubr.msk.bf16.mxu0 %vm551_vm1, %v2189_v16  ;;  %v786_v16 = vmul.f32 256.0, %v765_v14 }
  0x51   : > { %2023 = vmatmul.mubr.msk.bf16.gmra.mxu0 %vm551_vm1, %v2190_v17 }
  0x52   : > { %2026 = vmatprep.mubr.msk.bf16.mxu0 %vm551_vm1, %v2191_v18 }
  0x59   : > { %2027 = vmatmul.mubr.msk.bf16.gmra.mxu0 %vm551_vm1, %v2192_v19 }
  0x5a   : > { %2030 = vmatprep.mubr.msk.bf16.mxu0 %vm551_vm1, %v2193_v20  ;;  %v2767_v20 = vld [vmem:[%s3234_s4] sm:$0xff] }
  0x61   : > { %2031 = vmatmul.mubr.msk.bf16.gmra.mxu0 %vm551_vm1, %v2194_v21 }
  0x62   : > { %1146 = vmatprep.mubr.f32.mxu0 %v795_v26 }
  0xe9   : > { %v2571_v27 = vpop.f32.mrf.mxu0 }
  0xeb   : > { %v2573_v28 = vpop.f32.mrf.mxu0 }
  0xed   : > { %v2575_v29 = vpop.f32.mrf.mxu0 }
  0xef   : > { %v2577_v30 = vpop.f32.mrf.mxu0 }
  0xf1   : > { %v2579_v31 = vpop.f32.mrf.mxu0 }
  0xf3   : > { %v2581_v32 = vpop.f32.mrf.mxu0 }
  0xf5   : > { %v2583_v33 = vpop.f32.mrf.mxu0 }
  0xf7   : > { %v2585_v34 = vpop.f32.mrf.mxu0 }
  0xf9   : > { %v2587_v35 = vpop.f32.mrf.mxu0 }
  0xfb   : > { %v2589_v36 = vpop.f32.mrf.mxu0 }
  0xfd   : > { %v2591_v37 = vpop.f32.mrf.mxu0 }
  0xff   : > { %v2593_v38 = vpop.f32.mrf.mxu0 }
 0x101   : > { %v2595_v39 = vpop.f32.mrf.mxu0 }
 0x103   : > { %v2597_v40 = vpop.f32.mrf.mxu0 }
 0x105   : > { %v2599_v41 = vpop.f32.mrf.mxu0 }
 0x107   : > { %v2601_v42 = vpop.f32.mrf.mxu0 }
 0x109   : > { %v2603_v43 = vpop.f32.mrf.mxu0 }
 0x10b   : > { %v2605_v44 = vpop.f32.mrf.mxu0 }
 0x10d   : > { %v2607_v45 = vpop.f32.mrf.mxu0 }
 0x10f   : > { %v2609_v46 = vpop.f32.mrf.mxu0 }
 0x111   : > { %v2611_v47 = vpop.f32.mrf.mxu0 }
 0x113   : > { %v2613_v48 = vpop.f32.mrf.mxu0 }
 0x115   : > { %v2615_v49 = vpop.f32.mrf.mxu0 }
 0x117   : > { %v2617_v50 = vpop.f32.mrf.mxu0 }
 0x119   : > { %v2619_v51 = vpop.f32.mrf.mxu0 }
 0x11b   : > { %v2621_v52 = vpop.f32.mrf.mxu0 }
 0x11d   : > { %v2623_v53 = vpop.f32.mrf.mxu0 }
 0x11f   : > { %v2625_v54 = vpop.f32.mrf.mxu0 }
 0x121   : > { %v2627_v55 = vpop.f32.mrf.mxu0 }
 0x123   : > { %v2629_v56 = vpop.f32.mrf.mxu0 }
 0x125   : > { %v2631_v57 = vpop.f32.mrf.mxu0 }
 0x126   : > { %1884 = vmatprep.subr.mxu1 %v2631_v57 }
 0x127   : > { %1885 = vmatpush3.msra.mxu1 %v2599_v41  ;;  %v2636_v58 = vpop.f32.mrf.mxu0 }
 0x128   : > { %1886 = vmatprep.subr.mxu1 %v2627_v55 }
 0x129   : > { %1887 = vmatpush3.msra.mxu1 %v2595_v39 }
 0x12a   : > { %1888 = vmatprep.subr.mxu1 %v2636_v58 }
 0x12b   : > { %1889 = vmatpush3.msra.mxu1 %v2601_v42 }
 0x12c   : > { %1890 = vmatprep.subr.mxu1 %v2629_v56 }
 0x12d   : > { %1891 = vmatpush3.msra.mxu1 %v2597_v40 }
 0x12e   : > { %1892 = vmatprep.subr.mxu1 %v2623_v53 }
 0x12f   : > { %1893 = vmatpush3.msra.mxu1 %v2591_v37 }
 0x130   : > { %1894 = vmatprep.subr.mxu1 %v2619_v51 }
 0x131   : > { %1895 = vmatpush3.msra.mxu1 %v2587_v35 }
 0x132   : > { %1896 = vmatprep.subr.mxu1 %v2625_v54 }
 0x133   : > { %1897 = vmatpush3.msra.mxu1 %v2593_v38 }
 0x134   : > { %1898 = vmatprep.subr.mxu1 %v2621_v52 }
 0x135   : > { %1899 = vmatpush3.msra.mxu1 %v2589_v36 }
 0x136   : > { %1900 = vmatprep.subr.mxu1 %v2615_v49 }
 0x137   : > { %1901 = vmatpush3.msra.mxu1 %v2583_v33 }
 0x138   : > { %1902 = vmatprep.subr.mxu1 %v2611_v47 }
 0x139   : > { %1903 = vmatpush3.msra.mxu1 %v2579_v31 }
 0x13a   : > { %1904 = vmatprep.subr.mxu1 %v2617_v50 }
 0x13b   : > { %1905 = vmatpush3.msra.mxu1 %v2585_v34 }
 0x13c   : > { %1906 = vmatprep.subr.mxu1 %v2613_v48 }
 0x13d   : > { %1907 = vmatpush3.msra.mxu1 %v2581_v32 }
 0x13e   : > { %1908 = vmatprep.subr.mxu1 %v2607_v45 }
 0x13f   : > { %1909 = vmatpush3.msra.mxu1 %v2575_v29 }
 0x140   : > { %1910 = vmatprep.subr.mxu1 %v2603_v43 }
 0x141   : > { %1911 = vmatpush3.msra.mxu1 %v2571_v27 }
 0x142   : > { %1912 = vmatprep.subr.mxu1 %v2609_v46 }
 0x143   : > { %1913 = vmatpush3.msra.mxu1 %v2577_v30 }
 0x144   : > { %1914 = vmatprep.subr.mxu1 %v2605_v44 }
 0x145   : > { %1915 = vmatpush3.msra.mxu1 %v2573_v28 }
 0x146   : > { %863 = vmatmul.mubr.f32.vlgmr.msra.gmra.mxu1 %v2668_v60  ;;  %2034 = vmatprep.subr.mxu1 %v2403_v62 }
 0x147   : > { %2035 = vmatpush3.msra.mxu1 %v2675_v61  ;;  %2066 = vmatprep.mubr.msk.f32.mxu1 %vm2404_vm2, %v2403_v62 }
 0x148   : > { %2036 = vmatprep.subr.mxu1 %v2403_v62 }
 0x149   : > { %2037 = vmatpush3.msra.mxu1 %v2683_v63 }
 0x14a   : > { %2038 = vmatprep.subr.mxu1 %v2403_v62 }
 0x14b   : > { %2039 = vmatpush3.msra.mxu1 %v2690_v0 }
 0x14c   : > { %2040 = vmatprep.subr.mxu1 %v2403_v62 }
 0x14d   : > { %2041 = vmatpush3.msra.mxu1 %v2697_v1 }
 0x14e   : > { %2042 = vmatprep.subr.mxu1 %v2403_v62 }
 0x14f   : > { %2043 = vmatpush3.msra.mxu1 %v2704_v2 }
 0x150   : > { %2044 = vmatprep.subr.mxu1 %v2403_v62 }
 0x151   : > { %2045 = vmatpush3.msra.mxu1 %v2711_v3 }
 0x152   : > { %2046 = vmatprep.subr.mxu1 %v2403_v62 }
 0x153   : > { %2047 = vmatpush3.msra.mxu1 %v778_v4 }
 0x154   : > { %2048 = vmatprep.subr.mxu1 %v2403_v62 }
 0x155   : > { %2049 = vmatpush3.msra.mxu1 %v777_v5 }
 0x156   : > { %2050 = vmatprep.subr.mxu1 %v2403_v62 }
 0x157   : > { %2051 = vmatpush3.msra.mxu1 %v776_v6 }
 0x158   : > { %2052 = vmatprep.subr.mxu1 %v2403_v62 }
 0x159   : > { %2053 = vmatpush3.msra.mxu1 %v775_v7 }
 0x15a   : > { %2054 = vmatprep.subr.mxu1 %v2403_v62 }
 0x15b   : > { %2055 = vmatpush3.msra.mxu1 %v774_v8 }
 0x15c   : > { %2056 = vmatprep.subr.mxu1 %v2403_v62 }
 0x15d   : > { %2057 = vmatpush3.msra.mxu1 %v773_v9 }
 0x15e   : > { %2058 = vmatprep.subr.mxu1 %v2403_v62 }
 0x15f   : > { %2059 = vmatpush3.msra.mxu1 %v772_v10 }
 0x160   : > { %2060 = vmatprep.subr.mxu1 %v2403_v62 }
 0x161   : > { %2061 = vmatpush3.msra.mxu1 %v771_v11 }
 0x162   : > { %2062 = vmatprep.subr.mxu1 %v2403_v62 }
 0x163   : > { %2063 = vmatpush3.msra.mxu1 %v770_v12 }
 0x164   : > { %2064 = vmatprep.subr.mxu1 %v2403_v62 }
 0x165   : > { %2065 = vmatpush3.msra.mxu1 %v769_v13 }
 0x166   : > { %2069 = vmatprep.subr.mxu1 %v2403_v62 }
 0x206   : > { %v1916_v15 = vpop.f32.mrf.mxu1 }
 0x208   : > { %v1917_v17 = vpop.f32.mrf.mxu1 }
 0x209   : > { %v1918_v18 = vadd.f32 %v1917_v17, %v1916_v15 }
 0x20b   : > { %v865_v19 = vadd.f32 %v1918_v18, %v786_v16 }
 0x20d   : > { %2067 = vmatmul.mubr.f32.vlgmr.msra.gmra.mxu1 %v865_v19 }
 0x20e   : > { %2071 = vmatprep.mubr.msk.f32.mxu1 %vm2404_vm2, %v2403_v62  ;;  %2070 = vmatpush3.msra.mxu1 %v2767_v20 }
 0x20f   : > { %2074 = vmatprep.subr.mxu1 %v2403_v62 }
 0x2cd   : > { %v934_v21 = vpop.f32.mrf.mxu1 }
 0x2ce   : > { %v938_v22 = vmul.f32 0.0009765625, %v934_v21 }
 0x2cf   : > { %v2068_v23 = vpop.f32.mrf.mxu1 }
 0x2d0   : > { %2072 = vmatmul.mubr.msk.f32.vlgmr.msra.gmra.mxu1 %vm939_vm3, %v938_v22 }
 0x2d1   : > { %2075 = vmatpush3.msra.mxu1 %v2675_v61  ;;  %2106 = vmatprep.mubr.msk.f32.mxu1 %vm2404_vm2, %v2403_v62 }
 0x2d2   : > { %2076 = vmatprep.subr.mxu1 %v2403_v62 }
 0x2d3   : > { %2077 = vmatpush3.msra.mxu1 %v2683_v63 }
 0x2d4   : > { %2078 = vmatprep.subr.mxu1 %v2403_v62 }
 0x2d5   : > { %2079 = vmatpush3.msra.mxu1 %v2690_v0 }
 0x2d6   : > { %2080 = vmatprep.subr.mxu1 %v2403_v62 }
 0x2d7   : > { %2081 = vmatpush3.msra.mxu1 %v2697_v1 }
 0x2d8   : > { %2082 = vmatprep.subr.mxu1 %v2403_v62 }
 0x2d9   : > { %2083 = vmatpush3.msra.mxu1 %v2704_v2 }
 0x2da   : > { %2084 = vmatprep.subr.mxu1 %v2403_v62 }
 0x2db   : > { %2085 = vmatpush3.msra.mxu1 %v2711_v3 }
 0x2dc   : > { %2086 = vmatprep.subr.mxu1 %v2403_v62 }
 0x2dd   : > { %2087 = vmatpush3.msra.mxu1 %v778_v4 }
 0x2de   : > { %2088 = vmatprep.subr.mxu1 %v2403_v62 }
 0x2df   : > { %2089 = vmatpush3.msra.mxu1 %v777_v5 }
 0x2e0   : > { %2090 = vmatprep.subr.mxu1 %v2403_v62 }
 0x2e1   : > { %2091 = vmatpush3.msra.mxu1 %v776_v6 }
 0x2e2   : > { %2092 = vmatprep.subr.mxu1 %v2403_v62 }
 0x2e3   : > { %2093 = vmatpush3.msra.mxu1 %v775_v7 }
 0x2e4   : > { %2094 = vmatprep.subr.mxu1 %v2403_v62 }
 0x2e5   : > { %2095 = vmatpush3.msra.mxu1 %v774_v8 }
 0x2e6   : > { %2096 = vmatprep.subr.mxu1 %v2403_v62 }
 0x2e7   : > { %2097 = vmatpush3.msra.mxu1 %v773_v9 }
 0x2e8   : > { %2098 = vmatprep.subr.mxu1 %v2403_v62 }
 0x2e9   : > { %2099 = vmatpush3.msra.mxu1 %v772_v10 }
 0x2ea   : > { %2100 = vmatprep.subr.mxu1 %v2403_v62 }
 0x2eb   : > { %2101 = vmatpush3.msra.mxu1 %v771_v11 }
 0x2ec   : > { %2102 = vmatprep.subr.mxu1 %v2403_v62 }
 0x2ed   : > { %2103 = vmatpush3.msra.mxu1 %v770_v12 }
 0x2ee   : > { %2104 = vmatprep.subr.mxu1 %v2403_v62 }
 0x2ef   : > { %2105 = vmatpush3.msra.mxu1 %v769_v13 }
 0x390   : > { %v1009_v24 = vpop.f32.mrf.mxu1 }
 0x391   : > { %v2795_v26 = vsub.f32 %v765_v14, %v1009_v24 }
 0x392   : > { %v2073_v25 = vpop.f32.mrf.mxu1 }
 0x393   : > { %v2799_v61 = vrot.slane %v2795_v26, %v2660_v59 }
 0x395   : > { %v1033_v63 = vadd.f32 %v2599_v41, %v2799_v61  ;;  %v1049_v0 = vadd.f32 %v2631_v57, %v2799_v61  ;;  %v1048_v1 = vadd.f32 %v2627_v55, %v2799_v61  ;;  %v1032_v2 = vadd.f32 %v2595_v39, %v2799_v61 }
 0x396   : > { %v1047_v4 = vadd.f32 %v2799_v61, %v2636_v58  ;;  %v1031_v6 = vadd.f32 %v2799_v61, %v2601_v42  ;;  %v1046_v7 = vadd.f32 %v2799_v61, %v2629_v56  ;;  %v1030_v9 = vadd.f32 %v2799_v61, %v2597_v40 }
 0x397   : > { %v1065_v3 = vmul.f32 %v1033_v63, %v1033_v63  ;;  %v1081_v5 = vmul.f32 %v1049_v0, %v1049_v0  ;;  %v1080_v8 = vmul.f32 %v1048_v1, %v1048_v1  ;;  %v1064_v10 = vmul.f32 %v1032_v2, %v1032_v2 }
 0x398   : > { %v1045_v11 = vadd.f32 %v2623_v53, %v2799_v61  ;;  %v1079_v12 = vmul.f32 %v1047_v4, %v1047_v4  ;;  %v1029_v13 = vadd.f32 %v2591_v37, %v2799_v61  ;;  %v1063_v14 = vmul.f32 %v1031_v6, %v1031_v6 }
 0x399   : > { %1938 = vmatprep.subr.mxu0 %v1081_v5  ;;  %v1044_v15 = vadd.f32 %v2619_v51, %v2799_v61  ;;  %v1078_v16 = vmul.f32 %v1046_v7, %v1046_v7  ;;  %v1028_v17 = vadd.f32 %v2587_v35, %v2799_v61  ;;  %v1062_v18 = vmul.f32 %v1030_v9, %v1030_v9 }
 0x39a   : > { %1939 = vmatpush3.msra.mxu0 %v1065_v3  ;;  %v1043_v19 = vadd.f32 %v2799_v61, %v2625_v54  ;;  %v1077_v21 = vmul.f32 %v1045_v11, %v1045_v11  ;;  %v1027_v22 = vadd.f32 %v2799_v61, %v2593_v38  ;;  %v1061_v23 = vmul.f32 %v1029_v13, %v1029_v13 }
 0x39b   : > { %1940 = vmatprep.subr.mxu0 %v1080_v8  ;;  %v1042_v24 = vadd.f32 %v2799_v61, %v2621_v52  ;;  %v1076_v25 = vmul.f32 %v1044_v15, %v1044_v15  ;;  %v1026_v63 = vadd.f32 %v2799_v61, %v2589_v36  ;;  %v1060_v0 = vmul.f32 %v1028_v17, %v1028_v17 }
 0x39c   : > { %1941 = vmatpush3.msra.mxu0 %v1064_v10  ;;  %v1041_v1 = vadd.f32 %v2615_v49, %v2799_v61  ;;  %v1075_v2 = vmul.f32 %v1043_v19, %v1043_v19  ;;  %v1025_v3 = vadd.f32 %v2583_v33, %v2799_v61  ;;  %v1059_v4 = vmul.f32 %v1027_v22, %v1027_v22 }
 0x39d   : > { %1942 = vmatprep.subr.mxu0 %v1079_v12  ;;  %v1040_v5 = vadd.f32 %v2611_v47, %v2799_v61  ;;  %v1074_v6 = vmul.f32 %v1042_v24, %v1042_v24  ;;  %v1024_v7 = vadd.f32 %v2579_v31, %v2799_v61  ;;  %v1058_v8 = vmul.f32 %v1026_v63, %v1026_v63 }
 0x39e   : > { %1943 = vmatpush3.msra.mxu0 %v1063_v14  ;;  %v1039_v9 = vadd.f32 %v2799_v61, %v2617_v50  ;;  %v1073_v10 = vmul.f32 %v1041_v1, %v1041_v1  ;;  %v1023_v11 = vadd.f32 %v2799_v61, %v2585_v34  ;;  %v1057_v12 = vmul.f32 %v1025_v3, %v1025_v3 }
 0x39f   : > { %1944 = vmatprep.subr.mxu0 %v1078_v16  ;;  %v1038_v13 = vadd.f32 %v2799_v61, %v2613_v48  ;;  %v1072_v14 = vmul.f32 %v1040_v5, %v1040_v5  ;;  %v1022_v15 = vadd.f32 %v2799_v61, %v2581_v32  ;;  %v1056_v16 = vmul.f32 %v1024_v7, %v1024_v7 }
 0x3a0   : > { %1945 = vmatpush3.msra.mxu0 %v1062_v18  ;;  %v1037_v17 = vadd.f32 %v2607_v45, %v2799_v61  ;;  %v1071_v18 = vmul.f32 %v1039_v9, %v1039_v9  ;;  %v1021_v19 = vadd.f32 %v2575_v29, %v2799_v61  ;;  %v1036_v22 = vadd.f32 %v2603_v43, %v2799_v61 }
 0x3a1   : > { %1946 = vmatprep.subr.mxu0 %v1077_v21  ;;  %v1055_v21 = vmul.f32 %v1023_v11, %v1023_v11  ;;  %v1020_v24 = vadd.f32 %v2571_v27, %v2799_v61  ;;  %v1035_v63 = vadd.f32 %v2799_v61, %v2609_v46  ;;  %v1019_v1 = vadd.f32 %v2799_v61, %v2577_v30 }
 0x3a2   : > { %1947 = vmatpush3.msra.mxu0 %v1061_v23  ;;  %v1070_v23 = vmul.f32 %v1038_v13, %v1038_v13  ;;  %v1034_v3 = vadd.f32 %v2799_v61, %v2605_v44  ;;  %v1018_v5 = vadd.f32 %v2799_v61, %v2573_v28 }
 0x3a3   : > { %1948 = vmatprep.subr.mxu0 %v1076_v25  ;;  %v1054_v25 = vmul.f32 %v1022_v15, %v1022_v15  ;;  %v1067_v7 = vmul.f32 %v1035_v63, %v1035_v63  ;;  %v1304_v63 = vld [vmem:[%s401_s26] sm:$0x1]  ;;  %s2331_s26 = scalar_lea.vmem %s2330_s24, 8192 }
 0x3a4   : > { %1949 = vmatpush3.msra.mxu0 %v1060_v0  ;;  %v1069_v0 = vmul.f32 %v1037_v17, %v1037_v17  ;;  %v1066_v9 = vmul.f32 %v1034_v3, %v1034_v3  ;;  %p2333_p2 = scmp.lt.s32.totalorder %s2331_s26, %s2325_s22 }
 0x3a5   : > { %1950 = vmatprep.subr.mxu0 %v1075_v2  ;;  %v1053_v2 = vmul.f32 %v1021_v19, %v1021_v19  ;;  %v767_v19 = vld [vmem:[%s3232_s2 + $0x2] sm:$0x1] }
 0x3a6   : > { %1951 = vmatpush3.msra.mxu0 %v1059_v4  ;;  %v1068_v4 = vmul.f32 %v1036_v22, %v1036_v22  ;;  %p2334_p3 = por %p2333_p2, %p2332_p1 }
 0x3a7   : > { %1952 = vmatprep.subr.mxu0 %v1074_v6  ;;  %v1052_v6 = vmul.f32 %v1020_v24, %v1020_v24 }
 0x3a8   : > { %1953 = vmatpush3.msra.mxu0 %v1058_v8  ;;  %v1051_v8 = vmul.f32 %v1019_v1, %v1019_v1  ;;  %p2335_p5 = pnand %p2334_p3, %p2328_p0 }
 0x3a9   : > { %1954 = vmatprep.subr.mxu0 %v1073_v10  ;;  %v1050_v10 = vmul.f32 %v1018_v5, %v1018_v5 }
 0x3aa   : > { %1955 = vmatpush3.msra.mxu0 %v1057_v12 }
 0x3ab   : > { %1956 = vmatprep.subr.mxu0 %v1072_v14 }
 0x3ac   : > { %1957 = vmatpush3.msra.mxu0 %v1056_v16 }
 0x3ad   : > { %1958 = vmatprep.subr.mxu0 %v1071_v18 }
 0x3ae   : > { %1959 = vmatpush3.msra.mxu0 %v1055_v21  ;;  %v1300_v21 = vld [vmem:[%s395_s20] sm:$0x1] }
 0x3af   : > { %1960 = vmatprep.subr.mxu0 %v1070_v23  ;;  %v1301_v24 = vadd.f32 1.0, %v1300_v21 }
 0x3b0   : > { %1961 = vmatpush3.msra.mxu0 %v1054_v25 }
 0x3b1   : > { %1962 = vmatprep.subr.mxu0 %v1069_v0 }
 0x3b2   : > { %1963 = vmatpush3.msra.mxu0 %v1053_v2 }
 0x3b3   : > { %1964 = vmatprep.subr.mxu0 %v1068_v4 }
 0x3b4   : > { %1965 = vmatpush3.msra.mxu0 %v1052_v6 }
 0x3b5   : > { %1966 = vmatprep.subr.mxu0 %v1067_v7 }
 0x3b6   : > { %1967 = vmatpush3.msra.mxu0 %v1051_v8 }
 0x3b7   : > { %1968 = vmatprep.subr.mxu0 %v1066_v9 }
 0x3b8   : > { %1969 = vmatpush3.msra.mxu0 %v1050_v10 }
 0x3b9   : > { %1147 = vmatmul.mubr.f32.vlgmr.msra.gmra.mxu0 %v2668_v60  ;;  %2109 = vmatprep.subr.mxu0 %v2403_v62 }
 0x3ba   : > { %2110 = vmatpush3.msra.mxu0 %v2767_v20  ;;  %2111 = vmatprep.mubr.msk.f32.mxu0 %vm2404_vm2, %v2403_v62  ;;  %v766_v20 = vld [vmem:[%s3232_s2 + $0x1] sm:$0x1] }
 0x479   : > { %v1970_v61 = vpop.f32.mrf.mxu0 }
 0x47b   : > { %v1971_v11 = vpop.f32.mrf.mxu0 }
 0x47c   : > { %v1972_v12 = vadd.f32 %v1971_v11, %v1970_v61 }
 0x47e   : > { %2107 = vmatmul.mubr.f32.vlgmr.msra.gmra.mxu1 %v1972_v12 }
 0x53e   : > { %v1218_v13 = vpop.f32.mrf.mxu1 }
 0x53f   : > { %v1222_v14 = vmul.f32 0.0009765625, %v1218_v13 }
 0x540   : > { %v2108_v15 = vpop.f32.mrf.mxu1 }
 0x541   : > { %2112 = vmatmul.mubr.msk.f32.vlgmr.msra.gmra.mxu0 %vm939_vm3, %v1222_v14 }
 0x601   : > { %v1292_v16 = vpop.f32.mrf.mxu0 }
 0x602   : > { %v1293_v60 = vadd.f32 1e-05, %v1292_v16 }
 0x603   : > { %v2113_v17 = vpop.f32.mrf.mxu0 }
 0x604   : > { %2195 = vrsqrt.f32 %v1293_v60 }
 0x611   : > { %v2196_v62 = vpop.eup %2195 }
 0x612   : > { %v1297_v18 = vmul.f32 %v2196_v62, %v766_v20 }
 0x614   : > { %v1298_v22 = vmul.f32 %v1297_v18, %v2795_v26  ;;  %v1302_v0 = vmul.f32 %v1301_v24, %v1297_v18 }
 0x616   : > { %v1299_v23 = vadd.f32 %v1298_v22, %v767_v19  ;;  %v2887_v2 = vrot.slane %v1302_v0, %v2660_v59 }
 0x618   : > { %v1303_v25 = vmul.f32 %v1301_v24, %v1299_v23  ;;  %v1310_v4 = vmul.f32 %v2887_v2, %v2573_v28  ;;  %v1311_v26 = vmul.f32 %v2887_v2, %v2577_v30  ;;  %v1312_v5 = vmul.f32 %v2571_v27, %v2887_v2 }
 0x619   : > { %v1313_v6 = vmul.f32 %v2575_v29, %v2887_v2  ;;  %v1314_v7 = vmul.f32 %v2887_v2, %v2581_v32  ;;  %v1316_v29 = vmul.f32 %v2579_v31, %v2887_v2  ;;  %v1317_v9 = vmul.f32 %v2583_v33, %v2887_v2 }
 0x61a   : > { %v1305_v1 = vadd.f32 %v1304_v63, %v1303_v25  ;;  %v1318_v10 = vmul.f32 %v2887_v2, %v2589_v36  ;;  %v1319_v61 = vmul.f32 %v2887_v2, %v2593_v38  ;;  %v1320_v36 = vmul.f32 %v2587_v35, %v2887_v2 }
 0x61b   : > { %v1321_v16 = vmul.f32 %v2591_v37, %v2887_v2  ;;  %v1322_v20 = vmul.f32 %v2887_v2, %v2597_v40  ;;  %v1323_v18 = vmul.f32 %v2887_v2, %v2601_v42  ;;  %v1324_v21 = vmul.f32 %v2595_v39, %v2887_v2 }
 0x61c   : > { %v2890_v3 = vrot.slane %v1305_v1, %v2660_v59  ;;  %v1315_v59 = vmul.f32 %v2887_v2, %v2585_v34  ;;  %v1325_v23 = vmul.f32 %v2599_v41, %v2887_v2  ;;  %v1326_v25 = vmul.f32 %v2887_v2, %v2605_v44 }
 0x61d   : > { %v1327_v0 = vmul.f32 %v2887_v2, %v2609_v46 }
 0x61e   : > { %v2903_v8 = vadd.f32 %v2890_v3, %v1310_v4  ;;  %v2908_v28 = vadd.f32 %v2890_v3, %v1311_v26  ;;  %v2911_v30 = vadd.f32 %v2890_v3, %v1312_v5  ;;  %v2914_v27 = vadd.f32 %v2890_v3, %v1313_v6 }
 0x61f   : > { %v2919_v32 = vadd.f32 %v2890_v3, %v1314_v7  ;;  %v2924_v34 = vadd.f32 %v2890_v3, %v1315_v59  ;;  %v2931_v11 = vadd.f32 %v2890_v3, %v1316_v29  ;;  %v2935_v12 = vadd.f32 %v2890_v3, %v1317_v9 }
 0x620   : > { %v1824_v31 = vmul.f32 -1.442695, %v2903_v8  ;;  %v1825_v13 = vmul.f32 -1.442695, %v2908_v28  ;;  %v1826_v33 = vmul.f32 -1.442695, %v2911_v30  ;;  %v2943_v15 = vadd.f32 %v2890_v3, %v1318_v10 }
 0x621   : > { %v1827_v14 = vmul.f32 -1.442695, %v2914_v27  ;;  %v1828_v38 = vmul.f32 -1.442695, %v2919_v32  ;;  %v2949_v60 = vadd.f32 %v2890_v3, %v1319_v61  ;;  %v1829_v17 = vmul.f32 -1.442695, %v2924_v34 }
 0x622   : > { %2197 = vpow2.f32 %v1824_v31  ;;  %v2955_v35 = vadd.f32 %v2890_v3, %v1320_v36  ;;  %v1830_v62 = vmul.f32 -1.442695, %v2931_v11  ;;  %v2961_v37 = vadd.f32 %v2890_v3, %v1321_v16 }
 0x623   : > { %2199 = vpow2.f32 %v1825_v13  ;;  %v1831_v19 = vmul.f32 -1.442695, %v2935_v12  ;;  %v2967_v40 = vadd.f32 %v2890_v3, %v1322_v20  ;;  %v1832_v22 = vmul.f32 -1.442695, %v2943_v15 }
 0x624   : > { %2201 = vpow2.f32 %v1826_v33  ;;  %v2973_v42 = vadd.f32 %v2890_v3, %v1323_v18  ;;  %v1833_v24 = vmul.f32 -1.442695, %v2949_v60  ;;  %v2979_v39 = vadd.f32 %v2890_v3, %v1324_v21 }
 0x625   : > { %2203 = vpow2.f32 %v1827_v14  ;;  %v1834_v63 = vmul.f32 -1.442695, %v2955_v35  ;;  %v2985_v41 = vadd.f32 %v2890_v3, %v1325_v23  ;;  %v1835_v1 = vmul.f32 -1.442695, %v2961_v37 }
 0x626   : > { %2205 = vpow2.f32 %v1828_v38  ;;  %v1328_v4 = vmul.f32 %v2603_v43, %v2887_v2  ;;  %v2991_v44 = vadd.f32 %v2890_v3, %v1326_v25  ;;  %v1836_v26 = vmul.f32 -1.442695, %v2967_v40 }
 0x627   : > { %2207 = vpow2.f32 %v1829_v17  ;;  %v1329_v5 = vmul.f32 %v2607_v45, %v2887_v2  ;;  %v2997_v46 = vadd.f32 %v2890_v3, %v1327_v0  ;;  %v1837_v6 = vmul.f32 -1.442695, %v2973_v42 }
 0x628   : > { %2209 = vpow2.f32 %v1830_v62  ;;  %v1330_v7 = vmul.f32 %v2887_v2, %v2613_v48  ;;  %v3003_v43 = vadd.f32 %v2890_v3, %v1328_v4  ;;  %v1838_v59 = vmul.f32 -1.442695, %v2979_v39 }
 0x629   : > { %2211 = vpow2.f32 %v1831_v19  ;;  %v1331_v29 = vmul.f32 %v2887_v2, %v2617_v50  ;;  %v3009_v45 = vadd.f32 %v2890_v3, %v1329_v5  ;;  %v1839_v9 = vmul.f32 -1.442695, %v2985_v41 }
 0x62a   : > { %2213 = vpow2.f32 %v1832_v22  ;;  %v1332_v10 = vmul.f32 %v2611_v47, %v2887_v2  ;;  %v3015_v48 = vadd.f32 %v2890_v3, %v1330_v7  ;;  %v1840_v61 = vmul.f32 -1.442695, %v2991_v44 }
 0x62b   : > { %2215 = vpow2.f32 %v1833_v24  ;;  %v1333_v50 = vmul.f32 %v2615_v49, %v2887_v2  ;;  %v3023_v13 = vadd.f32 %v2890_v3, %v1331_v29  ;;  %v1841_v33 = vmul.f32 -1.442695, %v2997_v46 }
 0x62c   : > { %2217 = vpow2.f32 %v1834_v63  ;;  %v1334_v47 = vmul.f32 %v2887_v2, %v2621_v52  ;;  %v3031_v36 = vadd.f32 %v2890_v3, %v1332_v10  ;;  %v1842_v38 = vmul.f32 -1.442695, %v3003_v43 }
 0x62d   : > { %2219 = vpow2.f32 %v1835_v1  ;;  %v1335_v49 = vmul.f32 %v2887_v2, %v2625_v54  ;;  %v3037_v17 = vadd.f32 %v2890_v3, %v1333_v50  ;;  %v1843_v20 = vmul.f32 -1.442695, %v3009_v45 }
 0x62e   : > { %2221 = vpow2.f32 %v1836_v26  ;;  %v1336_v52 = vmul.f32 %v2619_v51, %v2887_v2  ;;  %v3043_v18 = vadd.f32 %v2890_v3, %v1334_v47  ;;  %v1844_v19 = vmul.f32 -1.442695, %v3015_v48 }
 0x62f   : > { %v3018_v31 = vpop.eup %2197  ;;  %2223 = vpow2.f32 %v1837_v6  ;;  %v1337_v54 = vmul.f32 %v2623_v53, %v2887_v2  ;;  %v3049_v22 = vadd.f32 %v2890_v3, %v1335_v49  ;;  %v1845_v23 = vmul.f32 -1.442695, %v3023_v13 }
 0x630   : > { %v3026_v14 = vpop.eup %2199  ;;  %2225 = vpow2.f32 %v1838_v59  ;;  %v1338_v51 = vmul.f32 %v2887_v2, %v2629_v56  ;;  %v3055_v25 = vadd.f32 %v2890_v3, %v1336_v52  ;;  %v1846_v63 = vmul.f32 -1.442695, %v3031_v36 }
 0x631   : > { %v2202_v16 = vpop.eup %2201  ;;  %2227 = vpow2.f32 %v1839_v9  ;;  %v1339_v53 = vmul.f32 %v2887_v2, %v2636_v58  ;;  %v3061_v1 = vadd.f32 %v2890_v3, %v1337_v54  ;;  %v1847_v4 = vmul.f32 -1.442695, %v3037_v17 }
 0x632   : > { %v2204_v62 = vpop.eup %2203  ;;  %2229 = vpow2.f32 %v1840_v61  ;;  %v1340_v56 = vmul.f32 %v2627_v55, %v2887_v2  ;;  %v3067_v5 = vadd.f32 %v2890_v3, %v1338_v51  ;;  %v1848_v6 = vmul.f32 -1.442695, %v3043_v18 }
 0x633   : > { %v2206_v21 = vpop.eup %2205  ;;  %2231 = vpow2.f32 %v1841_v33  ;;  %v1341_v58 = vmul.f32 %v2631_v57, %v2887_v2  ;;  %v3073_v59 = vadd.f32 %v2890_v3, %v1339_v53  ;;  %v1849_v29 = vmul.f32 -1.442695, %v3049_v22 }
 0x634   : > { %v2208_v24 = vpop.eup %2207  ;;  %2233 = vpow2.f32 %v1842_v38  ;;  %v3077_v10 = vadd.f32 %v2890_v3, %v1340_v56  ;;  %v1850_v55 = vmul.f32 -1.442695, %v3055_v25  ;;  %v1851_v57 = vmul.f32 -1.442695, %v3061_v1 }
 0x635   : > { %v2210_v0 = vpop.eup %2209  ;;  %2235 = vpow2.f32 %v1843_v20  ;;  %v3081_v50 = vadd.f32 %v2890_v3, %v1341_v58  ;;  %v1852_v33 = vmul.f32 -1.442695, %v3067_v5  ;;  %v1853_v38 = vmul.f32 -1.442695, %v3073_v59 }
 0x636   : > { %v2212_v26 = vpop.eup %2211  ;;  %2237 = vpow2.f32 %v1844_v19  ;;  %v1854_v20 = vmul.f32 -1.442695, %v3077_v10  ;;  %v1474_v54 = vadd.f32 1.0, %v3018_v31  ;;  %v1475_v51 = vadd.f32 1.0, %v3026_v14 }
 0x637   : > { %v2214_v7 = vpop.eup %2213  ;;  %2239 = vpow2.f32 %v1845_v23  ;;  %3242 = vst [vmem:[#allocation5_spill] sm:$0xff] %v3081_v50  ;;  %v1855_v3 = vmul.f32 -1.442695, %v3081_v50  ;;  %v1476_v53 = vadd.f32 1.0, %v2202_v16  ;;  %v1477_v56 = vadd.f32 1.0, %v2204_v62 }
 0x638   : > { %v2216_v9 = vpop.eup %2215  ;;  %2241 = vpow2.f32 %v1846_v63  ;;  %v1478_v58 = vadd.f32 1.0, %v2206_v21  ;;  %v1482_v50 = vadd.f32 1.0, %v2214_v7 }
 0x639   : > { %v2218_v61 = vpop.eup %2217  ;;  %2243 = vpow2.f32 %v1847_v4 }
 0x63a   : > { %v2220_v2 = vpop.eup %2219  ;;  %2245 = vpow2.f32 %v1848_v6  ;;  %v1484_v21 = vadd.f32 1.0, %v2218_v61 }
 0x63b   : > { %v2222_v47 = vpop.eup %2221  ;;  %2247 = vpow2.f32 %v1849_v29 }
 0x63c   : > { %v2224_v49 = vpop.eup %2223  ;;  %2249 = vpow2.f32 %v1850_v55  ;;  %v1479_v55 = vadd.f32 1.0, %v2208_v24  ;;  %v1485_v24 = vadd.f32 1.0, %v2220_v2 }
 0x63d   : > { %v2226_v52 = vpop.eup %2225  ;;  %2251 = vpow2.f32 %v1851_v57 }
 0x63e   : > { %v2228_v19 = vpop.eup %2227  ;;  %2253 = vpow2.f32 %v1852_v33  ;;  %v1480_v33 = vadd.f32 1.0, %v2210_v0  ;;  %v1486_v0 = vadd.f32 1.0, %v2222_v47 }
 0x63f   : > { %v2230_v23 = vpop.eup %2229  ;;  %2255 = vpow2.f32 %v1853_v38  ;;  %v1481_v38 = vadd.f32 1.0, %v2212_v26 }
 0x640   : > { %v2232_v63 = vpop.eup %2231  ;;  %2257 = vpow2.f32 %v1854_v20  ;;  %v1483_v20 = vadd.f32 1.0, %v2216_v9  ;;  %v1488_v9 = vadd.f32 1.0, %v2226_v52 }
 0x641   : > { %v2234_v4 = vpop.eup %2233  ;;  %2259 = vpow2.f32 %v1855_v3 }
 0x642   : > { %v2236_v6 = vpop.eup %2235  ;;  %2261 = vrcp.f32 %v1474_v54 }
 0x643   : > { %v2238_v29 = vpop.eup %2237  ;;  %2263 = vrcp.f32 %v1475_v51  ;;  %v1487_v51 = vadd.f32 1.0, %v2224_v49  ;;  %v1492_v49 = vadd.f32 1.0, %v2234_v4 }
 0x644   : > { %v2240_v57 = vpop.eup %2239  ;;  %2265 = vrcp.f32 %v1476_v53  ;;  %v1489_v53 = vadd.f32 1.0, %v2228_v19  ;;  %v1494_v19 = vadd.f32 1.0, %v2238_v29 }
 0x645   : > { %v2242_v31 = vpop.eup %2241  ;;  %2267 = vrcp.f32 %v1477_v56  ;;  %v1490_v56 = vadd.f32 1.0, %v2230_v23 }
 0x646   : > { %v2244_v14 = vpop.eup %2243  ;;  %2269 = vrcp.f32 %v1478_v58  ;;  %v1496_v4 = vadd.f32 1.0, %v2242_v31 }
 0x647   : > { %v2246_v16 = vpop.eup %2245  ;;  %2271 = vrcp.f32 %v1479_v55  ;;  %v1497_v29 = vadd.f32 1.0, %v2244_v14 }
 0x648   : > { %v2248_v62 = vpop.eup %2247  ;;  %2273 = vrcp.f32 %v1480_v33 }
 0x649   : > { %v2250_v3 = vpop.eup %2249  ;;  %2275 = vrcp.f32 %v1481_v38  ;;  %v1493_v38 = vadd.f32 1.0, %v2236_v6 }
 0x64a   : > { %v3091_v54 = vpop.eup %2251  ;;  %2277 = vrcp.f32 %v1482_v50  ;;  %v1491_v50 = vadd.f32 1.0, %v2232_v63  ;;  %v1495_v63 = vadd.f32 1.0, %v2240_v57 }
 0x64b   : > { %v3093_v26 = vpop.eup %2253  ;;  %2279 = vrcp.f32 %v1483_v20 }
 0x64c   : > { %v3095_v7 = vpop.eup %2255  ;;  %2281 = vrcp.f32 %v1484_v21 }
 0x64d   : > { %v3099_v61 = vpop.eup %2257  ;;  %2283 = vrcp.f32 %v1485_v24 }
 0x64e   : > { %v3101_v2 = vpop.eup %2259  ;;  %2285 = vrcp.f32 %v1486_v0  ;;  %v1498_v0 = vadd.f32 1.0, %v2246_v16 }
 0x64f   : > { %v2262_v47 = vpop.eup %2261  ;;  %2287 = vrcp.f32 %v1487_v51  ;;  %v1499_v51 = vadd.f32 1.0, %v2248_v62 }
 0x650   : > { %v2264_v58 = vpop.eup %2263  ;;  %2289 = vrcp.f32 %v1488_v9  ;;  %v1570_v55 = vmul.f32 %v2262_v47, %v2903_v8  ;;  %v1500_v9 = vadd.f32 1.0, %v2250_v3 }
 0x651   : > { %v2266_v33 = vpop.eup %2265  ;;  %2291 = vrcp.f32 %v1489_v53  ;;  %v1571_v52 = vmul.f32 %v2264_v58, %v2908_v28  ;;  %v1501_v53 = vadd.f32 1.0, %v3091_v54 }
 0x652   : > { %v2268_v20 = vpop.eup %2267  ;;  %2293 = vrcp.f32 %v1490_v56  ;;  %v1572_v21 = vmul.f32 %v2266_v33, %v2911_v30  ;;  %1602 = vst [vmem:[%s3106_s12] sm:$0xff] %v1570_v55 }
 0x653   : > { %v2270_v23 = vpop.eup %2269  ;;  %2295 = vrcp.f32 %v1491_v50  ;;  %v1573_v8 = vmul.f32 %v2268_v20, %v2914_v27  ;;  %1603 = vst [vmem:[%s3106_s12 + $0x8] sm:$0xff] %v1571_v52 }
 0x654   : > { %v2272_v28 = vpop.eup %2271  ;;  %2297 = vrcp.f32 %v1492_v49  ;;  %v1574_v6 = vmul.f32 %v2270_v23, %v2919_v32  ;;  %1604 = vst [vmem:[%s3106_s12 + $0x10] sm:$0xff] %v1572_v21 }
 0x655   : > { %v2274_v30 = vpop.eup %2273  ;;  %2299 = vrcp.f32 %v1493_v38  ;;  %v1575_v24 = vmul.f32 %v2272_v28, %v2924_v34  ;;  %1605 = vst [vmem:[%s3106_s12 + $0x18] sm:$0xff] %v1573_v8 }
 0x656   : > { %v2276_v57 = vpop.eup %2275  ;;  %2301 = vrcp.f32 %v1494_v19  ;;  %v1576_v27 = vmul.f32 %v2274_v30, %v2931_v11  ;;  %1606 = vst [vmem:[%s3106_s12 + $0x20] sm:$0xff] %v1574_v6 }
 0x657   : > { %v2278_v31 = vpop.eup %2277  ;;  %2303 = vrcp.f32 %v1495_v63  ;;  %v1577_v32 = vmul.f32 %v2276_v57, %v2935_v12  ;;  %1607 = vst [vmem:[%s3106_s12 + $0x28] sm:$0xff] %v1575_v24  ;;  %v1502_v12 = vadd.f32 1.0, %v3093_v26 }
 0x658   : > { %v2280_v14 = vpop.eup %2279  ;;  %2305 = vrcp.f32 %v1496_v4  ;;  %v1578_v34 = vmul.f32 %v2278_v31, %v2943_v15  ;;  %1608 = vst [vmem:[%s3106_s12 + $0x30] sm:$0xff] %v1576_v27  ;;  %v1503_v15 = vadd.f32 1.0, %v3095_v7 }
 0x659   : > { %v2282_v16 = vpop.eup %2281  ;;  %2307 = vrcp.f32 %v1497_v29  ;;  %v1579_v11 = vmul.f32 %v2280_v14, %v2949_v60  ;;  %1609 = vst [vmem:[%s3106_s12 + $0x38] sm:$0xff] %v1577_v32  ;;  %v1504_v60 = vadd.f32 1.0, %v3099_v61 }
 0x65a   : > { %v2284_v62 = vpop.eup %2283  ;;  %2309 = vrcp.f32 %v1498_v0  ;;  %v1580_v56 = vmul.f32 %v2282_v16, %v2955_v35  ;;  %1610 = vst [vmem:[%s3106_s12 + $0x40] sm:$0xff] %v1578_v34  ;;  %v1505_v35 = vadd.f32 1.0, %v3101_v2 }
 0x65b   : > { %v2286_v3 = vpop.eup %2285  ;;  %2311 = vrcp.f32 %v1499_v51  ;;  %v1581_v54 = vmul.f32 %v2284_v62, %v2961_v37  ;;  %1611 = vst [vmem:[%s3106_s12 + $0x48] sm:$0xff] %v1579_v11 }
 0x65c   : > { %v2288_v47 = vpop.eup %2287  ;;  %2313 = vrcp.f32 %v1500_v9  ;;  %v1582_v26 = vmul.f32 %v2286_v3, %v2967_v40  ;;  %1612 = vst [vmem:[%s3106_s12 + $0x50] sm:$0xff] %v1580_v56 }
 0x65d   : > { %v2290_v50 = vpop.eup %2289  ;;  %2315 = vrcp.f32 %v1501_v53  ;;  %v1583_v7 = vmul.f32 %v2288_v47, %v2973_v42  ;;  %1613 = vst [vmem:[%s3106_s12 + $0x58] sm:$0xff] %v1581_v54 }
 0x65e   : > { %v2292_v58 = vpop.eup %2291  ;;  %2317 = vrcp.f32 %v1502_v12  ;;  %v1584_v37 = vmul.f32 %v2290_v50, %v2979_v39  ;;  %1614 = vst [vmem:[%s3106_s12 + $0x60] sm:$0xff] %v1582_v26 }
 0x65f   : > { %v2294_v61 = vpop.eup %2293  ;;  %2319 = vrcp.f32 %v1503_v15  ;;  %v1585_v40 = vmul.f32 %v2292_v58, %v2985_v41  ;;  %1615 = vst [vmem:[%s3106_s12 + $0x68] sm:$0xff] %v1583_v7 }
 0x660   : > { %v2296_v49 = vpop.eup %2295  ;;  %2321 = vrcp.f32 %v1504_v60  ;;  %v1586_v2 = vmul.f32 %v2294_v61, %v2991_v44  ;;  %1616 = vst [vmem:[%s3106_s12 + $0x70] sm:$0xff] %v1584_v37 }
 0x661   : > { %v2298_v42 = vpop.eup %2297  ;;  %2323 = vrcp.f32 %v1505_v35  ;;  %v1587_v55 = vmul.f32 %v2296_v49, %v2997_v46  ;;  %1617 = vst [vmem:[%s3106_s12 + $0x78] sm:$0xff] %v1585_v40 }
 0x662   : > { %v2300_v39 = vpop.eup %2299  ;;  %v1588_v33 = vmul.f32 %v2298_v42, %v3003_v43  ;;  %1618 = vst [vmem:[%s3106_s12 + $0x80] sm:$0xff] %v1586_v2 }
 0x663   : > { %v2302_v41 = vpop.eup %2301  ;;  %v1589_v38 = vmul.f32 %v2300_v39, %v3009_v45  ;;  %1619 = vst [vmem:[%s3106_s12 + $0x88] sm:$0xff] %v1587_v55 }
 0x664   : > { %v2304_v52 = vpop.eup %2303  ;;  %v1590_v44 = vmul.f32 %v2302_v41, %v3015_v48  ;;  %1620 = vst [vmem:[%s3106_s12 + $0x90] sm:$0xff] %v1588_v33 }
 0x665   : > { %v2306_v20 = vpop.eup %2305  ;;  %v1591_v46 = vmul.f32 %v2304_v52, %v3023_v13  ;;  %1621 = vst [vmem:[%s3106_s12 + $0x98] sm:$0xff] %v1589_v38 }
 0x666   : > { %v2308_v19 = vpop.eup %2307  ;;  %v1592_v43 = vmul.f32 %v2306_v20, %v3031_v36  ;;  %1622 = vst [vmem:[%s3106_s12 + $0xa0] sm:$0xff] %v1590_v44 }
 0x667   : > { %v2310_v21 = vpop.eup %2309  ;;  %v1593_v45 = vmul.f32 %v2308_v19, %v3037_v17  ;;  %1623 = vst [vmem:[%s3106_s12 + $0xa8] sm:$0xff] %v1591_v46 }
 0x668   : > { %v2312_v23 = vpop.eup %2311  ;;  %v1594_v48 = vmul.f32 %v2310_v21, %v3043_v18  ;;  %1624 = vst [vmem:[%s3106_s12 + $0xb0] sm:$0xff] %v1592_v43 }
 0x669   : > { %v2314_v63 = vpop.eup %2313  ;;  %v1595_v13 = vmul.f32 %v2312_v23, %v3049_v22  ;;  %1625 = vst [vmem:[%s3106_s12 + $0xb8] sm:$0xff] %v1593_v45 }
 0x66a   : > { %v2316_v8 = vpop.eup %2315  ;;  %v1596_v36 = vmul.f32 %v2314_v63, %v3055_v25  ;;  %1626 = vst [vmem:[%s3106_s12 + $0xc0] sm:$0xff] %v1594_v48 }
 0x66b   : > { %v2318_v28 = vpop.eup %2317  ;;  %v1597_v4 = vmul.f32 %v2316_v8, %v3061_v1  ;;  %1627 = vst [vmem:[%s3106_s12 + $0xc8] sm:$0xff] %v1595_v13  ;;  %v3243_v1 = vld [vmem:[#allocation5_spill] sm:$0xff] }
 0x66c   : > { %v2320_v17 = vpop.eup %2319  ;;  %v1598_v18 = vmul.f32 %v2318_v28, %v3067_v5  ;;  %1628 = vst [vmem:[%s3106_s12 + $0xd0] sm:$0xff] %v1596_v36 }
 0x66d   : > { %v2322_v22 = vpop.eup %2321  ;;  %v1599_v6 = vmul.f32 %v2320_v17, %v3073_v59  ;;  %1629 = vst [vmem:[%s3106_s12 + $0xd8] sm:$0xff] %v1597_v4 }
 0x66e   : > { %v2324_v25 = vpop.eup %2323  ;;  %v1600_v30 = vmul.f32 %v2322_v22, %v3077_v10  ;;  %1630 = vst [vmem:[%s3106_s12 + $0xe0] sm:$0xff] %v1598_v18 }
 0x66f   : > { %v1601_v5 = vmul.f32 %v2324_v25, %v3243_v1  ;;  %1631 = vst [vmem:[%s3106_s12 + $0xe8] sm:$0xff] %v1599_v6 }
 0x670   : > { %1632 = vst [vmem:[%s3106_s12 + $0xf0] sm:$0xff] %v1600_v30 }
 0x671   : > { %1633 = vst [vmem:[%s3106_s12 + $0xf8] sm:$0xff] %v1601_v5 }
 0x672   : > { %2338 = shalt.err (!%p2335_p5)
}
 0x673   : > { %s2339_s25 = scalar_lea.hbm %s3175_s30, 4096  ;;  %s2343_s14 = scalar_lea.hbm %s3238_s8, 8192 }
 0x674   : > { %p2340_p6 = scmp.ne.s32.totalorder %s3175_s30, %s2339_s25  ;;  %p2344_p10 = scmp.lt.s32.totalorder %s3175_s30, %s3238_s8 }
 0x675   : > { %p2345_p11 = scmp.lt.s32.totalorder %s2343_s14, %s2339_s25 }
 0x676   : > { %p2341_p7 = pnand %p2340_p6, %p2493_p4 }
 0x677   : > { %p2346_p12 = por %p2345_p11, %p2344_p10 }
 0x678   : > { %p2342_p9 = pneg %p2341_p7 }
 0x67a   : > { %p2347_p13 = pnand %p2346_p12, %p2342_p9 }
 0x67c   : > { %2350 = shalt.err (!%p2347_p13)
}
 0x67d   : > { %s2406_s22 = smov 128   ;;  %s2407_s23 = smov 8  }
 0x67e   : > { %2115 = dma.vmem_to_hbm [thread:$0]  (%p2493_p4), %s3177_s16, 4096, %s3175_s30, %s3185_s21, %s2406_s22, %s2406_s22, %s2407_s23  }
 0x67f PF: > { %p2121_p0 = scmp.ge.s32.totalorder %s2401_s10, 2  ;;  %s1664_s24 = sand.u32 1, %s2381_s27  }
 0x680   : > { %s1665_s26 = scalar_lea.sflag [#allocation3], %s1664_s24 }
 0x681   : > { %p2118_p1 = pnand %p2121_p0, %p2500_p8 }
 0x683   : > { %p2119_p2 = pneg %p2118_p1 }
 0x685   : > { %2376 = dma.done.wait (%p2119_p2), %s1665_s26, 4096  }
 0x686   : > { %2378 = vsyncadd (%p2119_p2), %s1665_s26, 4294963200  ;;  %s21_s10 = sadd.s32 1, %s2401_s10   ;;  %s3244_s27 = smov %s2385_s28 }
 0x687   : > { %p18_p3 = scmp.ge.s32.totalorder %s21_s10, 4   ;;  %s3245_s28 = smov %s2389_s29 }
 0x688   : > { %s3246_s29 = smov %s2506_s18  ;;  %s3247_s30 = smov %s2397_s9 }
 0x689   : > { %s3248_s9 = smov %s3250_s13  ;;  %20 = sbr.rel (!%p18_p3) target bundleno = 4 (0x4), region = 99 }
 0x68e   :  { %1670 = vsyncpa [#allocation3], 1 }
 0x68f   :  { %1672 = vsyncpa [#allocation3 + $0x1], 1 }

</bundles_post_ra>
